<compile_context>
chip_gen: v7x
topology: tpu7x:2x2x1
jax: 0.10.0
libtpu: 0.0.40
codegen_flags: <defaults>
</compile_context>

<pallas_src>
import functools
import math

import jax
import jax.numpy as jnp
from jax.experimental import pallas as pl
from jax.experimental.pallas import tpu as pltpu

_INV_SQRT2 = 1.0 / math.sqrt(2.0)


def _gelu(x):
    # exact (erf-based) GELU, matching torch.nn.GELU default
    return 0.5 * x * (1.0 + jax.lax.erf(x * _INV_SQRT2))


def _fs(shape):
    # full-array block for a grid=(1,) kernel
    return pl.BlockSpec(shape, lambda *_: (0,) * len(shape))


def _use_fused_deconv2():
    # v6e / v7x have 256x256 MXUs where the block-diagonal d1 fusion fills K
    # exactly; v2-v5 have 128x128 MXUs where the per-d1 form is already
    # full-tile, so keep it unfused there.
    try:
        kind = jax.devices()[0].device_kind.lower()
    except Exception:
        return True
    return not any(t in kind for t in ("v2", "v3", "v4", "v5"))


def _pick_row_tile(H, W, B):
    best = H
    for th in (32, 16, 8, 4, 2, 1):
        if H % th == 0 and (th * W) % 128 == 0:
            best = th
            break
    # keep at least two parallel grid steps so both TensorCores get work
    if B * (H // best) < 2:
        for th in range(best - 1, 0, -1):
            if H % th == 0 and (th * W) % 128 == 0:
                best = th
                break
    return best


# --------------------------- token-side fused kernel ---------------------------
def _token_kernel(tok_ref, wtok_ref, btok_ref,
                  hw1_ref, hb1_ref, hw2_ref, hb2_ref, hw3_ref, hb3_ref,
                  iw1_ref, ib1_ref, iw2_ref, ib2_ref, iw3_ref, ib3_ref,
                  hyp_ref, iou_ref, *, B, Tm, tok_lo, C8):
    # TODO(synk): self.trm is an externally-injected two-way transformer in the
    # PyTorch module; a deterministic per-token linear projection stand-in is used.
    hs = jnp.dot(tok_ref[...], wtok_ref[...],
                 preferred_element_type=jnp.float32) + btok_ref[...]      # (Nt*B, C)

    # IoU head (weights already sliced to the requested mask tokens).
    q = hs[0:B, :].astype(jnp.bfloat16)
    q = jnp.maximum(jnp.dot(q, iw1_ref[...],
                            preferred_element_type=jnp.float32) + ib1_ref[...], 0.0)
    q = jnp.maximum(jnp.dot(q.astype(jnp.bfloat16), iw2_ref[...],
                            preferred_element_type=jnp.float32) + ib2_ref[...], 0.0)
    iou_ref[...] = jnp.dot(q.astype(jnp.bfloat16), iw3_ref[...],
                           preferred_element_type=jnp.float32) + ib3_ref[...]

    # hypernetwork MLPs -> block-diagonal hyper matrix consumed by kernel B:
    # hyp[b, d2*Tm + t, d2*C8 + c] = hyper[b, t, c]
    hyp_ref[...] = jnp.zeros(hyp_ref.shape, hyp_ref.dtype)
    for j in range(Tm):
        r0 = B * (1 + tok_lo + j)                     # rows of the j-th used mask token
        x = hs[r0:r0 + B, :].astype(jnp.bfloat16)
        h = jnp.maximum(jnp.dot(x, hw1_ref[j],
                                preferred_element_type=jnp.float32) + hb1_ref[j], 0.0)
        h = jnp.maximum(jnp.dot(h.astype(jnp.bfloat16), hw2_ref[j],
                                preferred_element_type=jnp.float32) + hb2_ref[j], 0.0)
        h = jnp.dot(h.astype(jnp.bfloat16), hw3_ref[j],
                    preferred_element_type=jnp.float32) + hb3_ref[j]      # (B, C8)
        for d2 in range(4):
            r = d2 * Tm + j
            hyp_ref[:, r:r + 1, d2 * C8:(d2 + 1) * C8] = h[:, None, :]


# --------------------- fused upscaling + mask-matmul kernel ---------------------
def _upscale_mask_kernel(src_ref, wsrcT_ref, bsrc_ref, w1T_ref, b1_ref,
                         mavg_ref, g_ref, be_ref, w2T_ref, b2_ref,
                         hyp_ref, out_ref, *, C4, C8, eps, fuse_d1):
    x = src_ref[0]                                                        # (C, P) bf16
    # TODO(synk): self.trm transformer stand-in on the image stream (per-pixel
    # linear; pos/dense embeddings folded into src by the wrapper).
    s = jnp.dot(wsrcT_ref[...], x, preferred_element_type=jnp.float32) + bsrc_ref[...]
    # ConvTranspose2d #1 (k=2, s=2) as matmul; rows grouped (d1 sub-pixel, C4)
    y = jnp.dot(w1T_ref[...], s.astype(jnp.bfloat16),
                preferred_element_type=jnp.float32) + b1_ref[...]         # (4*C4, P)

    # LayerNorm2d per (pixel, d1) over C4 channels, computed on the whole
    # grouped block via the block-diagonal averaging matmul (no odd slices).
    mu = jnp.dot(mavg_ref[...], y.astype(jnp.bfloat16),
                 preferred_element_type=jnp.float32)                      # (4*C4, P)
    dv = y - mu
    var = jnp.dot(mavg_ref[...], (dv * dv).astype(jnp.bfloat16),
                  preferred_element_type=jnp.float32)
    a = _gelu(g_ref[...] * (dv * jax.lax.rsqrt(var + eps)) + be_ref[...])
    ab = a.astype(jnp.bfloat16)                                           # (4*C4, P)

    hyp = hyp_ref[0]                                                      # (4*Tm, 4*C8) bf16
    if fuse_d1:
        # ConvTranspose2d #2 for all four d1 sub-pixels in one block-diagonal
        # matmul (full K on 256-wide MXUs); rows grouped (d1, d2, C8).
        z = jnp.dot(w2T_ref[...], ab,
                    preferred_element_type=jnp.float32) + b2_ref[...]     # (16*C8, P)
        zb = _gelu(z).astype(jnp.bfloat16)
        for d1 in range(4):
            m = jnp.dot(hyp, zb[d1 * 4 * C8:(d1 + 1) * 4 * C8, :],
                        preferred_element_type=jnp.float32)               # (4*Tm, P)
            out_ref[0, d1, :, :] = m.astype(out_ref.dtype)
    else:
        # 128x128-MXU chips (v5e): per-d1 matmuls already use full tiles.
        for d1 in range(4):
            z = jnp.dot(w2T_ref[...], ab[d1 * C4:(d1 + 1) * C4, :],
                        preferred_element_type=jnp.float32) + b2_ref[...]  # (4*C8, P)
            zb = _gelu(z).astype(jnp.bfloat16)
            m = jnp.dot(hyp, zb, preferred_element_type=jnp.float32)
            out_ref[0, d1, :, :] = m.astype(out_ref.dtype)


# ------------------------------- parameters -----------------------------------
def init_params(key, C, num_mask_tokens, iou_hidden):
    C4, C8 = C // 4, C // 8
    keys = iter(jax.random.split(key, 32))

    def rnd(shape, scale=0.05):
        return (scale * jax.random.normal(next(keys), shape)).astype(jnp.float32)

    return {
        "iou_token": rnd((1, C)),
        "mask_tokens": rnd((num_mask_tokens, C)),
        "trm_w_tok": rnd((C, C)), "trm_b_tok": rnd((C,)),
        "trm_w_src": rnd((C, C)), "trm_b_src": rnd((C,)),
        "up1_w": rnd((C, C4, 2, 2)), "up1_b": rnd((C4,)),
        "ln_gamma": jnp.ones((C4,), jnp.float32),
        "ln_beta": jnp.zeros((C4,), jnp.float32),
        "up2_w": rnd((C4, C8, 2, 2)), "up2_b": rnd((C8,)),
        "hyp_w1": rnd((num_mask_tokens, C, C)), "hyp_b1": rnd((num_mask_tokens, C)),
        "hyp_w2": rnd((num_mask_tokens, C, C)), "hyp_b2": rnd((num_mask_tokens, C)),
        "hyp_w3": rnd((num_mask_tokens, C, C8)), "hyp_b3": rnd((num_mask_tokens, C8)),
        "iou_w1": rnd((C, iou_hidden)), "iou_b1": rnd((iou_hidden,)),
        "iou_w2": rnd((iou_hidden, iou_hidden)), "iou_b2": rnd((iou_hidden,)),
        "iou_w3": rnd((iou_hidden, num_mask_tokens)), "iou_b3": rnd((num_mask_tokens,)),
    }


# --------------------------------- forward -------------------------------------
def mask_decoder_forward(p, image_embed, image_pos_embed, sparse_prompt_embed,
                         dense_prompt_embed, multimask_output=False):
    B = sparse_prompt_embed.shape[0]
    _, C, H, W = image_embed.shape
    T = p["mask_tokens"].shape[0]
    C4, C8 = C // 4, C // 8
    Hid = p["iou_w1"].shape[1]
    tok_lo, Tm = (1, T - 1) if multimask_output else (0, 1)
    fuse_d1 = _use_fused_deconv2()
    bf = lambda a: a.astype(jnp.bfloat16)

    # ---------------- token side: single fused kernel ----------------
    out_tok = jnp.concatenate([p["iou_token"], p["mask_tokens"]], axis=0)      # (1+T, C)
    tokens_tm = jnp.concatenate(
        [jnp.broadcast_to(out_tok[:, None, :], (1 + T, B, C)),
         jnp.transpose(sparse_prompt_embed, (1, 0, 2))], axis=0)               # (Nt, B, C)
    tokens_2d = bf(tokens_tm.reshape(-1, C))                                   # (Nt*B, C)
    NtB = tokens_2d.shape[0]

    sl = slice(tok_lo, tok_lo + Tm)        # only the requested mask tokens
    hw1, hb1 = bf(p["hyp_w1"][sl]), p["hyp_b1"][sl].reshape(Tm, 1, C)
    hw2, hb2 = bf(p["hyp_w2"][sl]), p["hyp_b2"][sl].reshape(Tm, 1, C)
    hw3, hb3 = bf(p["hyp_w3"][sl]), p["hyp_b3"][sl].reshape(Tm, 1, C8)
    iw3, ib3 = bf(p["iou_w3"][:, sl]), p["iou_b3"][sl].reshape(1, Tm)

    hyp_blk, iou_out = pl.pallas_call(
        functools.partial(_token_kernel, B=B, Tm=Tm, tok_lo=tok_lo, C8=C8),
        grid=(1,),
        in_specs=[
            _fs((NtB, C)),
            _fs((C, C)), _fs((1, C)),
            _fs((Tm, C, C)), _fs((Tm, 1, C)),
            _fs((Tm, C, C)), _fs((Tm, 1, C)),
            _fs((Tm, C, C8)), _fs((Tm, 1, C8)),
            _fs((C, Hid)), _fs((1, Hid)),
            _fs((Hid, Hid)), _fs((1, Hid)),
            _fs((Hid, Tm)), _fs((1, Tm)),
        ],
        out_specs=(_fs((B, 4 * Tm, 4 * C8)), _fs((B, Tm))),
        out_shape=(jax.ShapeDtypeStruct((B, 4 * Tm, 4 * C8), jnp.float32),
                   jax.ShapeDtypeStruct((B, Tm), jnp.float32)),
        compiler_params=pltpu.CompilerParams(dimension_semantics=("arbitrary",)),
    )(tokens_2d,
      bf(p["trm_w_tok"]), p["trm_b_tok"].reshape(1, C),
      hw1, hb1, hw2, hb2, hw3, hb3,
      bf(p["iou_w1"]), p["iou_b1"].reshape(1, Hid),
      bf(p["iou_w2"]), p["iou_b2"].reshape(1, Hid),
      iw3, ib3)
    hyp_bf = bf(hyp_blk)                                                       # tiny

    # ---------------- image side: single fused kernel ----------------
    # src stays channels-major (NCHW): broadcast add + bf16 cast + reshape only,
    # no HBM transpose round-trip.
    src_cf = bf(image_embed + image_pos_embed + dense_prompt_embed).reshape(B, C, H * W)

    wsrcT = bf(p["trm_w_src"].T)
    bsrc = p["trm_b_src"].reshape(C, 1)
    # ConvTranspose2d(k=2,s=2) weights as transposed matmuls (rows grouped by sub-pixel)
    w1m = jnp.transpose(p["up1_w"], (0, 2, 3, 1)).reshape(C, 4 * C4)           # cols (d1, C4)
    w1T = bf(w1m.T)                                                            # (4*C4, C)
    b1 = jnp.tile(p["up1_b"], 4).reshape(4 * C4, 1)
    g = jnp.tile(p["ln_gamma"], 4).reshape(4 * C4, 1)
    be = jnp.tile(p["ln_beta"], 4).reshape(4 * C4, 1)
    # block-diagonal group-averaging matrix for LayerNorm2d statistics
    grp = jnp.repeat(jnp.arange(4), C4)
    mavg = bf((grp[:, None] == grp[None, :]).astype(jnp.float32) / C4)         # (4*C4, 4*C4)

    w2m = jnp.transpose(p["up2_w"], (0, 2, 3, 1)).reshape(C4, 4 * C8)          # cols (d2, C8)
    if fuse_d1:
        w2T = bf(jnp.kron(jnp.eye(4, dtype=jnp.float32), w2m.T))               # (16*C8, 4*C4)
        b2 = jnp.tile(p["up2_b"], 16).reshape(16 * C8, 1)
    else:
        w2T = bf(w2m.T)                                                        # (4*C8, C4)
        b2 = jnp.tile(p["up2_b"], 4).reshape(4 * C8, 1)
    W2R, W2C = w2T.shape

    TH = _pick_row_tile(H, W, B)
    P = TH * W
    R = H // TH

    masks_blocked = pl.pallas_call(
        functools.partial(_upscale_mask_kernel, C4=C4, C8=C8, eps=1e-6, fuse_d1=fuse_d1),
        grid=(B, R),
        in_specs=[
            pl.BlockSpec((1, C, P), lambda b, r: (b, 0, r)),
            pl.BlockSpec((C, C), lambda b, r: (0, 0)),
            pl.BlockSpec((C, 1), lambda b, r: (0, 0)),
            pl.BlockSpec((4 * C4, C), lambda b, r: (0, 0)),
            pl.BlockSpec((4 * C4, 1), lambda b, r: (0, 0)),
            pl.BlockSpec((4 * C4, 4 * C4), lambda b, r: (0, 0)),
            pl.BlockSpec((4 * C4, 1), lambda b, r: (0, 0)),
            pl.BlockSpec((4 * C4, 1), lambda b, r: (0, 0)),
            pl.BlockSpec((W2R, W2C), lambda b, r: (0, 0)),
            pl.BlockSpec((W2R, 1), lambda b, r: (0, 0)),
            pl.BlockSpec((1, 4 * Tm, 4 * C8), lambda b, r: (b, 0, 0)),
        ],
        out_specs=pl.BlockSpec((1, 4, 4 * Tm, P), lambda b, r: (b, 0, 0, r)),
        out_shape=jax.ShapeDtypeStruct((B, 4, 4 * Tm, H * W), jnp.bfloat16),
        compiler_params=pltpu.CompilerParams(
            dimension_semantics=("parallel", "parallel"),
            vmem_limit_bytes=48 * 1024 * 1024),
    )(src_cf, wsrcT, bsrc, w1T, b1, mavg, g, be, w2T, b2, hyp_bf)

    # un-block the (2,2,2,2) sub-pixel layout -> (B, Tm, 4H, 4W); bf16, tiny.
    m = masks_blocked.reshape(B, 2, 2, 2, 2, Tm, H, W)   # (b, kh1, kw1, kh2, kw2, t, i, j)
    masks = jnp.transpose(m, (0, 5, 6, 1, 3, 7, 2, 4)).reshape(B, Tm, 4 * H, 4 * W)
    return masks, iou_out


if __name__ == "__main__":
    C, H, W = 32, 8, 8          # trm_dim=32, image-embedding spatial 8x8
    B, S = 2, 3                 # batch of prompts, 3 sparse prompt tokens
    T = 3 + 1                   # num_multitask_outputs + 1
    params = init_params(jax.random.PRNGKey(42), C, T, iou_hidden=64)

    key = jax.random.PRNGKey(0)
    k1, k2, k3, k4 = jax.random.split(key, 4)
    image_embed = jax.random.normal(k1, (1, C, H, W), jnp.float32)
    image_pos_embed = jax.random.normal(k2, (1, C, H, W), jnp.float32)
    sparse_prompt_embed = jax.random.normal(k3, (B, S, C), jnp.float32)
    dense_prompt_embed = jax.random.normal(k4, (B, C, H, W), jnp.float32)

    fwd = jax.jit(mask_decoder_forward, static_argnames=("multimask_output",))

    masks, iou_pred = fwd(params, image_embed, image_pos_embed,
                          sparse_prompt_embed, dense_prompt_embed,
                          multimask_output=False)
    jax.block_until_ready((masks, iou_pred))
    assert masks.shape == (B, 1, 4 * H, 4 * W), masks.shape
    assert iou_pred.shape == (B, 1), iou_pred.shape
    assert bool(jnp.all(jnp.isfinite(masks.astype(jnp.float32))))
    assert bool(jnp.all(jnp.isfinite(iou_pred)))

    masks_m, iou_m = fwd(params, image_embed, image_pos_embed,
                         sparse_prompt_embed, dense_prompt_embed,
                         multimask_output=True)
    jax.block_until_ready((masks_m, iou_m))
    assert masks_m.shape == (B, T - 1, 4 * H, 4 * W), masks_m.shape
    assert iou_m.shape == (B, T - 1), iou_m.shape
    assert bool(jnp.all(jnp.isfinite(masks_m.astype(jnp.float32))))

    print("KERNEL_OK")
</pallas_src>

<mosaic_0001>
module attributes {stable_mosaic.version = 11 : i64} {
  func.func @_token_kernel(%arg0: i32, %arg1: memref<16x32xbf16, #tpu.memory_space<vmem>>, %arg2: memref<32x32xbf16, #tpu.memory_space<vmem>>, %arg3: memref<1x32xf32, #tpu.memory_space<vmem>>, %arg4: memref<1x32x32xbf16, #tpu.memory_space<vmem>>, %arg5: memref<1x1x32xf32, #tpu.memory_space<vmem>>, %arg6: memref<1x32x32xbf16, #tpu.memory_space<vmem>>, %arg7: memref<1x1x32xf32, #tpu.memory_space<vmem>>, %arg8: memref<1x32x4xbf16, #tpu.memory_space<vmem>>, %arg9: memref<1x1x4xf32, #tpu.memory_space<vmem>>, %arg10: memref<32x64xbf16, #tpu.memory_space<vmem>>, %arg11: memref<1x64xf32, #tpu.memory_space<vmem>>, %arg12: memref<64x64xbf16, #tpu.memory_space<vmem>>, %arg13: memref<1x64xf32, #tpu.memory_space<vmem>>, %arg14: memref<64x1xbf16, #tpu.memory_space<vmem>>, %arg15: memref<1x1xf32, #tpu.memory_space<vmem>>, %arg16: memref<2x4x16xf32, #tpu.memory_space<vmem>>, %arg17: memref<2x1xf32, #tpu.memory_space<vmem>>) attributes {dimension_semantics = [#tpu.dimension_semantics<arbitrary>], iteration_bounds = array<i64: 1>, scalar_prefetch = 0 : i64, scratch_operands = 0 : i64, tpu.core_type = #tpu.core_type<tc>, window_params = [{pipeline_mode = #tpu.pipeline_mode<synchronous>, transform_indices = @transform_0, window_bounds = array<i64: 16, 32>}, {pipeline_mode = #tpu.pipeline_mode<synchronous>, transform_indices = @transform_1, window_bounds = array<i64: 32, 32>}, {pipeline_mode = #tpu.pipeline_mode<synchronous>, transform_indices = @transform_2, window_bounds = array<i64: 1, 32>}, {pipeline_mode = #tpu.pipeline_mode<synchronous>, transform_indices = @transform_3, window_bounds = array<i64: 1, 32, 32>}, {pipeline_mode = #tpu.pipeline_mode<synchronous>, transform_indices = @transform_4, window_bounds = array<i64: 1, 1, 32>}, {pipeline_mode = #tpu.pipeline_mode<synchronous>, transform_indices = @transform_5, window_bounds = array<i64: 1, 32, 32>}, {pipeline_mode = #tpu.pipeline_mode<synchronous>, transform_indices = @transform_6, window_bounds = array<i64: 1, 1, 32>}, {pipeline_mode = #tpu.pipeline_mode<synchronous>, transform_indices = @transform_7, window_bounds = array<i64: 1, 32, 4>}, {pipeline_mode = #tpu.pipeline_mode<synchronous>, transform_indices = @transform_8, window_bounds = array<i64: 1, 1, 4>}, {pipeline_mode = #tpu.pipeline_mode<synchronous>, transform_indices = @transform_9, window_bounds = array<i64: 32, 64>}, {pipeline_mode = #tpu.pipeline_mode<synchronous>, transform_indices = @transform_10, window_bounds = array<i64: 1, 64>}, {pipeline_mode = #tpu.pipeline_mode<synchronous>, transform_indices = @transform_11, window_bounds = array<i64: 64, 64>}, {pipeline_mode = #tpu.pipeline_mode<synchronous>, transform_indices = @transform_12, window_bounds = array<i64: 1, 64>}, {pipeline_mode = #tpu.pipeline_mode<synchronous>, transform_indices = @transform_13, window_bounds = array<i64: 64, 1>}, {pipeline_mode = #tpu.pipeline_mode<synchronous>, transform_indices = @transform_14, window_bounds = array<i64: 1, 1>}, {pipeline_mode = #tpu.pipeline_mode<synchronous>, transform_indices = @transform_15, window_bounds = array<i64: 2, 4, 16>}, {pipeline_mode = #tpu.pipeline_mode<synchronous>, transform_indices = @transform_16, window_bounds = array<i64: 2, 1>}]} {
    %c0 = arith.constant 0 : index
    %c0_0 = arith.constant 0 : index
    %0 = vector.load %arg1[%c0, %c0_0] : memref<16x32xbf16, #tpu.memory_space<vmem>>, vector<16x32xbf16>
    %c0_1 = arith.constant 0 : index
    %c0_2 = arith.constant 0 : index
    %1 = vector.load %arg2[%c0_1, %c0_2] : memref<32x32xbf16, #tpu.memory_space<vmem>>, vector<32x32xbf16>
    %cst = arith.constant dense<0.000000e+00> : vector<16x32xf32>
    %2 = tpu.matmul %0, %1, %cst {dimension_numbers = #tpu.dot_dimension_numbers<[1], [0], [0], [1], [0, 0, 1, 1], [], []>} : vector<16x32xbf16>, vector<32x32xbf16>, vector<16x32xf32> -> vector<16x32xf32>
    %c0_3 = arith.constant 0 : index
    %c0_4 = arith.constant 0 : index
    %3 = vector.load %arg3[%c0_3, %c0_4] : memref<1x32xf32, #tpu.memory_space<vmem>>, vector<1x32xf32>
    %4 = vector.broadcast %3 : vector<1x32xf32> to vector<16x32xf32>
    %5 = arith.addf %2, %4 : vector<16x32xf32>
    %6 = vector.extract_strided_slice %5 {offsets = [0, 0], sizes = [2, 32], strides = [1, 1]} : vector<16x32xf32> to vector<2x32xf32>
    %7 = arith.truncf %6 : vector<2x32xf32> to vector<2x32xbf16>
    %c0_5 = arith.constant 0 : index
    %c0_6 = arith.constant 0 : index
    %8 = vector.load %arg10[%c0_5, %c0_6] : memref<32x64xbf16, #tpu.memory_space<vmem>>, vector<32x64xbf16>
    %cst_7 = arith.constant dense<0.000000e+00> : vector<2x64xf32>
    %9 = tpu.matmul %7, %8, %cst_7 {dimension_numbers = #tpu.dot_dimension_numbers<[1], [0], [0], [1], [0, 0, 1, 1], [], []>} : vector<2x32xbf16>, vector<32x64xbf16>, vector<2x64xf32> -> vector<2x64xf32>
    %c0_8 = arith.constant 0 : index
    %c0_9 = arith.constant 0 : index
    %10 = vector.load %arg11[%c0_8, %c0_9] : memref<1x64xf32, #tpu.memory_space<vmem>>, vector<1x64xf32>
    %11 = vector.broadcast %10 : vector<1x64xf32> to vector<2x64xf32>
    %12 = arith.addf %9, %11 : vector<2x64xf32>
    %cst_10 = arith.constant 0.000000e+00 : f32
    %13 = vector.broadcast %cst_10 : f32 to vector<2x64xf32>
    %14 = arith.maximumf %12, %13 : vector<2x64xf32>
    %15 = arith.truncf %14 : vector<2x64xf32> to vector<2x64xbf16>
    %c0_11 = arith.constant 0 : index
    %c0_12 = arith.constant 0 : index
    %16 = vector.load %arg12[%c0_11, %c0_12] : memref<64x64xbf16, #tpu.memory_space<vmem>>, vector<64x64xbf16>
    %cst_13 = arith.constant dense<0.000000e+00> : vector<2x64xf32>
    %17 = tpu.matmul %15, %16, %cst_13 {dimension_numbers = #tpu.dot_dimension_numbers<[1], [0], [0], [1], [0, 0, 1, 1], [], []>} : vector<2x64xbf16>, vector<64x64xbf16>, vector<2x64xf32> -> vector<2x64xf32>
    %c0_14 = arith.constant 0 : index
    %c0_15 = arith.constant 0 : index
    %18 = vector.load %arg13[%c0_14, %c0_15] : memref<1x64xf32, #tpu.memory_space<vmem>>, vector<1x64xf32>
    %19 = vector.broadcast %18 : vector<1x64xf32> to vector<2x64xf32>
    %20 = arith.addf %17, %19 : vector<2x64xf32>
    %cst_16 = arith.constant 0.000000e+00 : f32
    %21 = vector.broadcast %cst_16 : f32 to vector<2x64xf32>
    %22 = arith.maximumf %20, %21 : vector<2x64xf32>
    %23 = arith.truncf %22 : vector<2x64xf32> to vector<2x64xbf16>
    %c0_17 = arith.constant 0 : index
    %c0_18 = arith.constant 0 : index
    %24 = vector.load %arg14[%c0_17, %c0_18] : memref<64x1xbf16, #tpu.memory_space<vmem>>, vector<64x1xbf16>
    %cst_19 = arith.constant dense<0.000000e+00> : vector<2x1xf32>
    %25 = tpu.matmul %23, %24, %cst_19 {dimension_numbers = #tpu.dot_dimension_numbers<[1], [0], [0], [1], [0, 0, 1, 1], [], []>} : vector<2x64xbf16>, vector<64x1xbf16>, vector<2x1xf32> -> vector<2x1xf32>
    %c0_20 = arith.constant 0 : index
    %c0_21 = arith.constant 0 : index
    %26 = vector.load %arg15[%c0_20, %c0_21] : memref<1x1xf32, #tpu.memory_space<vmem>>, vector<1x1xf32>
    %27 = vector.broadcast %26 : vector<1x1xf32> to vector<2x1xf32>
    %28 = arith.addf %25, %27 : vector<2x1xf32>
    %c0_22 = arith.constant 0 : index
    %c0_23 = arith.constant 0 : index
    %29 = vector.load %arg17[%c0_22, %c0_23] : memref<2x1xf32, #tpu.memory_space<vmem>>, vector<2x1xf32>
    tpu.vector_store %arg17[%c0_22, %c0_23], %28 {strides = array<i32>} : memref<2x1xf32, #tpu.memory_space<vmem>>, vector<2x1xf32>,
    %cst_24 = arith.constant 0.000000e+00 : f32
    %30 = vector.broadcast %cst_24 : f32 to vector<2x4x16xf32>
    %c0_25 = arith.constant 0 : index
    %c0_26 = arith.constant 0 : index
    %c0_27 = arith.constant 0 : index
    %31 = vector.load %arg16[%c0_25, %c0_26, %c0_27] : memref<2x4x16xf32, #tpu.memory_space<vmem>>, vector<2x4x16xf32>
    tpu.vector_store %arg16[%c0_25, %c0_26, %c0_27], %30 {strides = array<i32>} : memref<2x4x16xf32, #tpu.memory_space<vmem>>, vector<2x4x16xf32>,
    %32 = vector.extract_strided_slice %5 {offsets = [2, 0], sizes = [2, 32], strides = [1, 1]} : vector<16x32xf32> to vector<2x32xf32>
    %33 = arith.truncf %32 : vector<2x32xf32> to vector<2x32xbf16>
    %c0_28 = arith.constant 0 : index
    %c0_29 = arith.constant 0 : index
    %c0_30 = arith.constant 0 : index
    %34 = vector.load %arg4[%c0_28, %c0_29, %c0_30] : memref<1x32x32xbf16, #tpu.memory_space<vmem>>, vector<1x32x32xbf16>
    %35 = vector.shape_cast %34 : vector<1x32x32xbf16> to vector<32x32xbf16>
    %cst_31 = arith.constant dense<0.000000e+00> : vector<2x32xf32>
    %36 = tpu.matmul %33, %35, %cst_31 {dimension_numbers = #tpu.dot_dimension_numbers<[1], [0], [0], [1], [0, 0, 1, 1], [], []>} : vector<2x32xbf16>, vector<32x32xbf16>, vector<2x32xf32> -> vector<2x32xf32>
    %c0_32 = arith.constant 0 : index
    %c0_33 = arith.constant 0 : index
    %c0_34 = arith.constant 0 : index
    %37 = vector.load %arg5[%c0_32, %c0_33, %c0_34] : memref<1x1x32xf32, #tpu.memory_space<vmem>>, vector<1x1x32xf32>
    %38 = vector.shape_cast %37 : vector<1x1x32xf32> to vector<1x32xf32>
    %39 = vector.broadcast %38 : vector<1x32xf32> to vector<2x32xf32>
    %40 = arith.addf %36, %39 : vector<2x32xf32>
    %cst_35 = arith.constant 0.000000e+00 : f32
    %41 = vector.broadcast %cst_35 : f32 to vector<2x32xf32>
    %42 = arith.maximumf %40, %41 : vector<2x32xf32>
    %43 = arith.truncf %42 : vector<2x32xf32> to vector<2x32xbf16>
    %c0_36 = arith.constant 0 : index
    %c0_37 = arith.constant 0 : index
    %c0_38 = arith.constant 0 : index
    %44 = vector.load %arg6[%c0_36, %c0_37, %c0_38] : memref<1x32x32xbf16, #tpu.memory_space<vmem>>, vector<1x32x32xbf16>
    %45 = vector.shape_cast %44 : vector<1x32x32xbf16> to vector<32x32xbf16>
    %cst_39 = arith.constant dense<0.000000e+00> : vector<2x32xf32>
    %46 = tpu.matmul %43, %45, %cst_39 {dimension_numbers = #tpu.dot_dimension_numbers<[1], [0], [0], [1], [0, 0, 1, 1], [], []>} : vector<2x32xbf16>, vector<32x32xbf16>, vector<2x32xf32> -> vector<2x32xf32>
    %c0_40 = arith.constant 0 : index
    %c0_41 = arith.constant 0 : index
    %c0_42 = arith.constant 0 : index
    %47 = vector.load %arg7[%c0_40, %c0_41, %c0_42] : memref<1x1x32xf32, #tpu.memory_space<vmem>>, vector<1x1x32xf32>
    %48 = vector.shape_cast %47 : vector<1x1x32xf32> to vector<1x32xf32>
    %49 = vector.broadcast %48 : vector<1x32xf32> to vector<2x32xf32>
    %50 = arith.addf %46, %49 : vector<2x32xf32>
    %cst_43 = arith.constant 0.000000e+00 : f32
    %51 = vector.broadcast %cst_43 : f32 to vector<2x32xf32>
    %52 = arith.maximumf %50, %51 : vector<2x32xf32>
    %53 = arith.truncf %52 : vector<2x32xf32> to vector<2x32xbf16>
    %c0_44 = arith.constant 0 : index
    %c0_45 = arith.constant 0 : index
    %c0_46 = arith.constant 0 : index
    %54 = vector.load %arg8[%c0_44, %c0_45, %c0_46] : memref<1x32x4xbf16, #tpu.memory_space<vmem>>, vector<1x32x4xbf16>
    %55 = vector.shape_cast %54 : vector<1x32x4xbf16> to vector<32x4xbf16>
    %cst_47 = arith.constant dense<0.000000e+00> : vector<2x4xf32>
    %56 = tpu.matmul %53, %55, %cst_47 {dimension_numbers = #tpu.dot_dimension_numbers<[1], [0], [0], [1], [0, 0, 1, 1], [], []>} : vector<2x32xbf16>, vector<32x4xbf16>, vector<2x4xf32> -> vector<2x4xf32>
    %c0_48 = arith.constant 0 : index
    %c0_49 = arith.constant 0 : index
    %c0_50 = arith.constant 0 : index
    %57 = vector.load %arg9[%c0_48, %c0_49, %c0_50] : memref<1x1x4xf32, #tpu.memory_space<vmem>>, vector<1x1x4xf32>
    %58 = vector.shape_cast %57 : vector<1x1x4xf32> to vector<1x4xf32>
    %59 = vector.broadcast %58 : vector<1x4xf32> to vector<2x4xf32>
    %60 = arith.addf %56, %59 : vector<2x4xf32>
    %61 = vector.shape_cast %60 : vector<2x4xf32> to vector<2x1x4xf32>
    %c0_51 = arith.constant 0 : index
    %c0_52 = arith.constant 0 : index
    %c0_53 = arith.constant 0 : index
    %62 = vector.load %arg16[%c0_51, %c0_52, %c0_53] : memref<2x4x16xf32, #tpu.memory_space<vmem>>, vector<2x1x4xf32>
    tpu.vector_store %arg16[%c0_51, %c0_52, %c0_53], %61 {strides = array<i32>} : memref<2x4x16xf32, #tpu.memory_space<vmem>>, vector<2x1x4xf32>,
    %63 = vector.shape_cast %60 : vector<2x4xf32> to vector<2x1x4xf32>
    %c0_54 = arith.constant 0 : index
    %c1 = arith.constant 1 : index
    %c4 = arith.constant 4 : index
    %64 = vector.load %arg16[%c0_54, %c1, %c4] : memref<2x4x16xf32, #tpu.memory_space<vmem>>, vector<2x1x4xf32>
    tpu.vector_store %arg16[%c0_54, %c1, %c4], %63 {strides = array<i32>} : memref<2x4x16xf32, #tpu.memory_space<vmem>>, vector<2x1x4xf32>,
    %65 = vector.shape_cast %60 : vector<2x4xf32> to vector<2x1x4xf32>
    %c0_55 = arith.constant 0 : index
    %c2 = arith.constant 2 : index
    %c8 = arith.constant 8 : index
    %66 = vector.load %arg16[%c0_55, %c2, %c8] : memref<2x4x16xf32, #tpu.memory_space<vmem>>, vector<2x1x4xf32>
    tpu.vector_store %arg16[%c0_55, %c2, %c8], %65 {strides = array<i32>} : memref<2x4x16xf32, #tpu.memory_space<vmem>>, vector<2x1x4xf32>,
    %67 = vector.shape_cast %60 : vector<2x4xf32> to vector<2x1x4xf32>
    %c0_56 = arith.constant 0 : index
    %c3 = arith.constant 3 : index
    %c12 = arith.constant 12 : index
    %68 = vector.load %arg16[%c0_56, %c3, %c12] : memref<2x4x16xf32, #tpu.memory_space<vmem>>, vector<2x1x4xf32>
    tpu.vector_store %arg16[%c0_56, %c3, %c12], %67 {strides = array<i32>} : memref<2x4x16xf32, #tpu.memory_space<vmem>>, vector<2x1x4xf32>,
    return
  }
  func.func @transform_0(%arg0: i32) -> (i32, i32) {
    %c0_i32 = arith.constant 0 : i32
    %c0_i32_0 = arith.constant 0 : i32
    %c0_i32_1 = arith.constant 0 : i32
    return %c0_i32, %c0_i32_0 : i32, i32
  }
  func.func @transform_1(%arg0: i32) -> (i32, i32) {
    %c0_i32 = arith.constant 0 : i32
    %c0_i32_0 = arith.constant 0 : i32
    %c0_i32_1 = arith.constant 0 : i32
    return %c0_i32, %c0_i32_0 : i32, i32
  }
  func.func @transform_2(%arg0: i32) -> (i32, i32) {
    %c0_i32 = arith.constant 0 : i32
    %c0_i32_0 = arith.constant 0 : i32
    %c0_i32_1 = arith.constant 0 : i32
    return %c0_i32, %c0_i32_0 : i32, i32
  }
  func.func @transform_3(%arg0: i32) -> (i32, i32, i32) {
    %c0_i32 = arith.constant 0 : i32
    %c0_i32_0 = arith.constant 0 : i32
    %c0_i32_1 = arith.constant 0 : i32
    %c0_i32_2 = arith.constant 0 : i32
    return %c0_i32, %c0_i32_0, %c0_i32_1 : i32, i32, i32
  }
  func.func @transform_4(%arg0: i32) -> (i32, i32, i32) {
    %c0_i32 = arith.constant 0 : i32
    %c0_i32_0 = arith.constant 0 : i32
    %c0_i32_1 = arith.constant 0 : i32
    %c0_i32_2 = arith.constant 0 : i32
    return %c0_i32, %c0_i32_0, %c0_i32_1 : i32, i32, i32
  }
  func.func @transform_5(%arg0: i32) -> (i32, i32, i32) {
    %c0_i32 = arith.constant 0 : i32
    %c0_i32_0 = arith.constant 0 : i32
    %c0_i32_1 = arith.constant 0 : i32
    %c0_i32_2 = arith.constant 0 : i32
    return %c0_i32, %c0_i32_0, %c0_i32_1 : i32, i32, i32
  }
  func.func @transform_6(%arg0: i32) -> (i32, i32, i32) {
    %c0_i32 = arith.constant 0 : i32
    %c0_i32_0 = arith.constant 0 : i32
    %c0_i32_1 = arith.constant 0 : i32
    %c0_i32_2 = arith.constant 0 : i32
    return %c0_i32, %c0_i32_0, %c0_i32_1 : i32, i32, i32
  }
  func.func @transform_7(%arg0: i32) -> (i32, i32, i32) {
    %c0_i32 = arith.constant 0 : i32
    %c0_i32_0 = arith.constant 0 : i32
    %c0_i32_1 = arith.constant 0 : i32
    %c0_i32_2 = arith.constant 0 : i32
    return %c0_i32, %c0_i32_0, %c0_i32_1 : i32, i32, i32
  }
  func.func @transform_8(%arg0: i32) -> (i32, i32, i32) {
    %c0_i32 = arith.constant 0 : i32
    %c0_i32_0 = arith.constant 0 : i32
    %c0_i32_1 = arith.constant 0 : i32
    %c0_i32_2 = arith.constant 0 : i32
    return %c0_i32, %c0_i32_0, %c0_i32_1 : i32, i32, i32
  }
  func.func @transform_9(%arg0: i32) -> (i32, i32) {
    %c0_i32 = arith.constant 0 : i32
    %c0_i32_0 = arith.constant 0 : i32
    %c0_i32_1 = arith.constant 0 : i32
    return %c0_i32, %c0_i32_0 : i32, i32
  }
  func.func @transform_10(%arg0: i32) -> (i32, i32) {
    %c0_i32 = arith.constant 0 : i32
    %c0_i32_0 = arith.constant 0 : i32
    %c0_i32_1 = arith.constant 0 : i32
    return %c0_i32, %c0_i32_0 : i32, i32
  }
  func.func @transform_11(%arg0: i32) -> (i32, i32) {
    %c0_i32 = arith.constant 0 : i32
    %c0_i32_0 = arith.constant 0 : i32
    %c0_i32_1 = arith.constant 0 : i32
    return %c0_i32, %c0_i32_0 : i32, i32
  }
  func.func @transform_12(%arg0: i32) -> (i32, i32) {
    %c0_i32 = arith.constant 0 : i32
    %c0_i32_0 = arith.constant 0 : i32
    %c0_i32_1 = arith.constant 0 : i32
    return %c0_i32, %c0_i32_0 : i32, i32
  }
  func.func @transform_13(%arg0: i32) -> (i32, i32) {
    %c0_i32 = arith.constant 0 : i32
    %c0_i32_0 = arith.constant 0 : i32
    %c0_i32_1 = arith.constant 0 : i32
    return %c0_i32, %c0_i32_0 : i32, i32
  }
  func.func @transform_14(%arg0: i32) -> (i32, i32) {
    %c0_i32 = arith.constant 0 : i32
    %c0_i32_0 = arith.constant 0 : i32
    %c0_i32_1 = arith.constant 0 : i32
    return %c0_i32, %c0_i32_0 : i32, i32
  }
  func.func @transform_15(%arg0: i32) -> (i32, i32, i32) {
    %c0_i32 = arith.constant 0 : i32
    %c0_i32_0 = arith.constant 0 : i32
    %c0_i32_1 = arith.constant 0 : i32
    %c0_i32_2 = arith.constant 0 : i32
    return %c0_i32, %c0_i32_0, %c0_i32_1 : i32, i32, i32
  }
  func.func @transform_16(%arg0: i32) -> (i32, i32) {
    %c0_i32 = arith.constant 0 : i32
    %c0_i32_0 = arith.constant 0 : i32
    %c0_i32_1 = arith.constant 0 : i32
    return %c0_i32, %c0_i32_0 : i32, i32
  }
}

module attributes {stable_mosaic.version = 11 : i64} {
  func.func @_upscale_mask_kernel(%arg0: i32, %arg1: i32, %arg2: memref<1x32x64xbf16, #tpu.memory_space<vmem>>, %arg3: memref<32x32xbf16, #tpu.memory_space<vmem>>, %arg4: memref<32x1xf32, #tpu.memory_space<vmem>>, %arg5: memref<32x32xbf16, #tpu.memory_space<vmem>>, %arg6: memref<32x1xf32, #tpu.memory_space<vmem>>, %arg7: memref<32x32xbf16, #tpu.memory_space<vmem>>, %arg8: memref<32x1xf32, #tpu.memory_space<vmem>>, %arg9: memref<32x1xf32, #tpu.memory_space<vmem>>, %arg10: memref<64x32xbf16, #tpu.memory_space<vmem>>, %arg11: memref<64x1xf32, #tpu.memory_space<vmem>>, %arg12: memref<1x4x16xbf16, #tpu.memory_space<vmem>>, %arg13: memref<1x4x4x64xbf16, #tpu.memory_space<vmem>>) attributes {dimension_semantics = [#tpu.dimension_semantics<parallel>, #tpu.dimension_semantics<parallel>], iteration_bounds = array<i64: 2, 1>, scalar_prefetch = 0 : i64, scratch_operands = 0 : i64, tpu.core_type = #tpu.core_type<tc>, window_params = [{transform_indices = @transform_0, window_bounds = array<i64: 1, 32, 64>}, {pipeline_mode = #tpu.pipeline_mode<synchronous>, transform_indices = @transform_1, window_bounds = array<i64: 32, 32>}, {pipeline_mode = #tpu.pipeline_mode<synchronous>, transform_indices = @transform_2, window_bounds = array<i64: 32, 1>}, {pipeline_mode = #tpu.pipeline_mode<synchronous>, transform_indices = @transform_3, window_bounds = array<i64: 32, 32>}, {pipeline_mode = #tpu.pipeline_mode<synchronous>, transform_indices = @transform_4, window_bounds = array<i64: 32, 1>}, {pipeline_mode = #tpu.pipeline_mode<synchronous>, transform_indices = @transform_5, window_bounds = array<i64: 32, 32>}, {pipeline_mode = #tpu.pipeline_mode<synchronous>, transform_indices = @transform_6, window_bounds = array<i64: 32, 1>}, {pipeline_mode = #tpu.pipeline_mode<synchronous>, transform_indices = @transform_7, window_bounds = array<i64: 32, 1>}, {pipeline_mode = #tpu.pipeline_mode<synchronous>, transform_indices = @transform_8, window_bounds = array<i64: 64, 32>}, {pipeline_mode = #tpu.pipeline_mode<synchronous>, transform_indices = @transform_9, window_bounds = array<i64: 64, 1>}, {transform_indices = @transform_10, window_bounds = array<i64: 1, 4, 16>}, {transform_indices = @transform_11, window_bounds = array<i64: 1, 4, 4, 64>}]} {
    %c0 = arith.constant 0 : index
    %c0_0 = arith.constant 0 : index
    %c0_1 = arith.constant 0 : index
    %0 = vector.load %arg2[%c0, %c0_0, %c0_1] : memref<1x32x64xbf16, #tpu.memory_space<vmem>>, vector<1x32x64xbf16>
    %1 = vector.shape_cast %0 : vector<1x32x64xbf16> to vector<32x64xbf16>
    %c0_2 = arith.constant 0 : index
    %c0_3 = arith.constant 0 : index
    %2 = vector.load %arg3[%c0_2, %c0_3] : memref<32x32xbf16, #tpu.memory_space<vmem>>, vector<32x32xbf16>
    %cst = arith.constant dense<0.000000e+00> : vector<32x64xf32>
    %3 = tpu.matmul %2, %1, %cst {dimension_numbers = #tpu.dot_dimension_numbers<[1], [0], [0], [1], [0, 0, 1, 1], [], []>} : vector<32x32xbf16>, vector<32x64xbf16>, vector<32x64xf32> -> vector<32x64xf32>
    %c0_4 = arith.constant 0 : index
    %c0_5 = arith.constant 0 : index
    %4 = vector.load %arg4[%c0_4, %c0_5] : memref<32x1xf32, #tpu.memory_space<vmem>>, vector<32x1xf32>
    %5 = vector.broadcast %4 : vector<32x1xf32> to vector<32x64xf32>
    %6 = arith.addf %3, %5 : vector<32x64xf32>
    %c0_6 = arith.constant 0 : index
    %c0_7 = arith.constant 0 : index
    %7 = vector.load %arg5[%c0_6, %c0_7] : memref<32x32xbf16, #tpu.memory_space<vmem>>, vector<32x32xbf16>
    %8 = arith.truncf %6 : vector<32x64xf32> to vector<32x64xbf16>
    %cst_8 = arith.constant dense<0.000000e+00> : vector<32x64xf32>
    %9 = tpu.matmul %7, %8, %cst_8 {dimension_numbers = #tpu.dot_dimension_numbers<[1], [0], [0], [1], [0, 0, 1, 1], [], []>} : vector<32x32xbf16>, vector<32x64xbf16>, vector<32x64xf32> -> vector<32x64xf32>
    %c0_9 = arith.constant 0 : index
    %c0_10 = arith.constant 0 : index
    %10 = vector.load %arg6[%c0_9, %c0_10] : memref<32x1xf32, #tpu.memory_space<vmem>>, vector<32x1xf32>
    %11 = vector.broadcast %10 : vector<32x1xf32> to vector<32x64xf32>
    %12 = arith.addf %9, %11 : vector<32x64xf32>
    %c0_11 = arith.constant 0 : index
    %c0_12 = arith.constant 0 : index
    %13 = vector.load %arg7[%c0_11, %c0_12] : memref<32x32xbf16, #tpu.memory_space<vmem>>, vector<32x32xbf16>
    %14 = arith.truncf %12 : vector<32x64xf32> to vector<32x64xbf16>
    %cst_13 = arith.constant dense<0.000000e+00> : vector<32x64xf32>
    %15 = tpu.matmul %13, %14, %cst_13 {dimension_numbers = #tpu.dot_dimension_numbers<[1], [0], [0], [1], [0, 0, 1, 1], [], []>} : vector<32x32xbf16>, vector<32x64xbf16>, vector<32x64xf32> -> vector<32x64xf32>
    %16 = arith.subf %12, %15 : vector<32x64xf32>
    %c0_14 = arith.constant 0 : index
    %c0_15 = arith.constant 0 : index
    %17 = vector.load %arg7[%c0_14, %c0_15] : memref<32x32xbf16, #tpu.memory_space<vmem>>, vector<32x32xbf16>
    %18 = arith.mulf %16, %16 : vector<32x64xf32>
    %19 = arith.truncf %18 : vector<32x64xf32> to vector<32x64xbf16>
    %cst_16 = arith.constant dense<0.000000e+00> : vector<32x64xf32>
    %20 = tpu.matmul %17, %19, %cst_16 {dimension_numbers = #tpu.dot_dimension_numbers<[1], [0], [0], [1], [0, 0, 1, 1], [], []>} : vector<32x32xbf16>, vector<32x64xbf16>, vector<32x64xf32> -> vector<32x64xf32>
    %c0_17 = arith.constant 0 : index
    %c0_18 = arith.constant 0 : index
    %21 = vector.load %arg8[%c0_17, %c0_18] : memref<32x1xf32, #tpu.memory_space<vmem>>, vector<32x1xf32>
    %cst_19 = arith.constant 9.99999997E-7 : f32
    %22 = vector.broadcast %cst_19 : f32 to vector<32x64xf32>
    %23 = arith.addf %20, %22 : vector<32x64xf32>
    %24 = math.rsqrt %23 : vector<32x64xf32>
    %25 = arith.mulf %16, %24 : vector<32x64xf32>
    %26 = vector.broadcast %21 : vector<32x1xf32> to vector<32x64xf32>
    %27 = arith.mulf %26, %25 : vector<32x64xf32>
    %c0_20 = arith.constant 0 : index
    %c0_21 = arith.constant 0 : index
    %28 = vector.load %arg9[%c0_20, %c0_21] : memref<32x1xf32, #tpu.memory_space<vmem>>, vector<32x1xf32>
    %29 = vector.broadcast %28 : vector<32x1xf32> to vector<32x64xf32>
    %30 = arith.addf %27, %29 : vector<32x64xf32>
    %cst_22 = arith.constant 5.000000e-01 : f32
    %31 = vector.broadcast %cst_22 : f32 to vector<32x64xf32>
    %32 = arith.mulf %31, %30 : vector<32x64xf32>
    %cst_23 = arith.constant 0.707106769 : f32
    %33 = vector.broadcast %cst_23 : f32 to vector<32x64xf32>
    %34 = arith.mulf %30, %33 : vector<32x64xf32>
    %35 = math.erf %34 : vector<32x64xf32>
    %cst_24 = arith.constant 1.000000e+00 : f32
    %36 = vector.broadcast %cst_24 : f32 to vector<32x64xf32>
    %37 = arith.addf %36, %35 : vector<32x64xf32>
    %38 = arith.mulf %32, %37 : vector<32x64xf32>
    %39 = arith.truncf %38 : vector<32x64xf32> to vector<32x64xbf16>
    %c0_25 = arith.constant 0 : index
    %c0_26 = arith.constant 0 : index
    %c0_27 = arith.constant 0 : index
    %40 = vector.load %arg12[%c0_25, %c0_26, %c0_27] : memref<1x4x16xbf16, #tpu.memory_space<vmem>>, vector<1x4x16xbf16>
    %41 = vector.shape_cast %40 : vector<1x4x16xbf16> to vector<4x16xbf16>
    %c0_28 = arith.constant 0 : index
    %c0_29 = arith.constant 0 : index
    %42 = vector.load %arg10[%c0_28, %c0_29] : memref<64x32xbf16, #tpu.memory_space<vmem>>, vector<64x32xbf16>
    %cst_30 = arith.constant dense<0.000000e+00> : vector<64x64xf32>
    %43 = tpu.matmul %42, %39, %cst_30 {dimension_numbers = #tpu.dot_dimension_numbers<[1], [0], [0], [1], [0, 0, 1, 1], [], []>} : vector<64x32xbf16>, vector<32x64xbf16>, vector<64x64xf32> -> vector<64x64xf32>
    %c0_31 = arith.constant 0 : index
    %c0_32 = arith.constant 0 : index
    %44 = vector.load %arg11[%c0_31, %c0_32] : memref<64x1xf32, #tpu.memory_space<vmem>>, vector<64x1xf32>
    %45 = vector.broadcast %44 : vector<64x1xf32> to vector<64x64xf32>
    %46 = arith.addf %43, %45 : vector<64x64xf32>
    %cst_33 = arith.constant 5.000000e-01 : f32
    %47 = vector.broadcast %cst_33 : f32 to vector<64x64xf32>
    %48 = arith.mulf %47, %46 : vector<64x64xf32>
    %cst_34 = arith.constant 0.707106769 : f32
    %49 = vector.broadcast %cst_34 : f32 to vector<64x64xf32>
    %50 = arith.mulf %46, %49 : vector<64x64xf32>
    %51 = math.erf %50 : vector<64x64xf32>
    %cst_35 = arith.constant 1.000000e+00 : f32
    %52 = vector.broadcast %cst_35 : f32 to vector<64x64xf32>
    %53 = arith.addf %52, %51 : vector<64x64xf32>
    %54 = arith.mulf %48, %53 : vector<64x64xf32>
    %55 = arith.truncf %54 : vector<64x64xf32> to vector<64x64xbf16>
    %56 = vector.extract_strided_slice %55 {offsets = [0, 0], sizes = [16, 64], strides = [1, 1]} : vector<64x64xbf16> to vector<16x64xbf16>
    %cst_36 = arith.constant dense<0.000000e+00> : vector<4x64xf32>
    %57 = tpu.matmul %41, %56, %cst_36 {dimension_numbers = #tpu.dot_dimension_numbers<[1], [0], [0], [1], [0, 0, 1, 1], [], []>} : vector<4x16xbf16>, vector<16x64xbf16>, vector<4x64xf32> -> vector<4x64xf32>
    %58 = arith.truncf %57 : vector<4x64xf32> to vector<4x64xbf16>
    %c0_37 = arith.constant 0 : index
    %c0_38 = arith.constant 0 : index
    %c0_39 = arith.constant 0 : index
    %c0_40 = arith.constant 0 : index
    %59 = vector.load %arg13[%c0_37, %c0_38, %c0_39, %c0_40] : memref<1x4x4x64xbf16, #tpu.memory_space<vmem>>, vector<1x1x4x64xbf16>
    %60 = vector.shape_cast %59 : vector<1x1x4x64xbf16> to vector<4x64xbf16>
    %61 = vector.shape_cast %58 : vector<4x64xbf16> to vector<1x1x4x64xbf16>
    tpu.vector_store %arg13[%c0_37, %c0_38, %c0_39, %c0_40], %61 {strides = array<i32>} : memref<1x4x4x64xbf16, #tpu.memory_space<vmem>>, vector<1x1x4x64xbf16>,
    %62 = vector.extract_strided_slice %55 {offsets = [16, 0], sizes = [16, 64], strides = [1, 1]} : vector<64x64xbf16> to vector<16x64xbf16>
    %cst_41 = arith.constant dense<0.000000e+00> : vector<4x64xf32>
    %63 = tpu.matmul %41, %62, %cst_41 {dimension_numbers = #tpu.dot_dimension_numbers<[1], [0], [0], [1], [0, 0, 1, 1], [], []>} : vector<4x16xbf16>, vector<16x64xbf16>, vector<4x64xf32> -> vector<4x64xf32>
    %64 = arith.truncf %63 : vector<4x64xf32> to vector<4x64xbf16>
    %c0_42 = arith.constant 0 : index
    %c1 = arith.constant 1 : index
    %c0_43 = arith.constant 0 : index
    %c0_44 = arith.constant 0 : index
    %65 = vector.load %arg13[%c0_42, %c1, %c0_43, %c0_44] : memref<1x4x4x64xbf16, #tpu.memory_space<vmem>>, vector<1x1x4x64xbf16>
    %66 = vector.shape_cast %65 : vector<1x1x4x64xbf16> to vector<4x64xbf16>
    %67 = vector.shape_cast %64 : vector<4x64xbf16> to vector<1x1x4x64xbf16>
    tpu.vector_store %arg13[%c0_42, %c1, %c0_43, %c0_44], %67 {strides = array<i32>} : memref<1x4x4x64xbf16, #tpu.memory_space<vmem>>, vector<1x1x4x64xbf16>,
    %68 = vector.extract_strided_slice %55 {offsets = [32, 0], sizes = [16, 64], strides = [1, 1]} : vector<64x64xbf16> to vector<16x64xbf16>
    %cst_45 = arith.constant dense<0.000000e+00> : vector<4x64xf32>
    %69 = tpu.matmul %41, %68, %cst_45 {dimension_numbers = #tpu.dot_dimension_numbers<[1], [0], [0], [1], [0, 0, 1, 1], [], []>} : vector<4x16xbf16>, vector<16x64xbf16>, vector<4x64xf32> -> vector<4x64xf32>
    %70 = arith.truncf %69 : vector<4x64xf32> to vector<4x64xbf16>
    %c0_46 = arith.constant 0 : index
    %c2 = arith.constant 2 : index
    %c0_47 = arith.constant 0 : index
    %c0_48 = arith.constant 0 : index
    %71 = vector.load %arg13[%c0_46, %c2, %c0_47, %c0_48] : memref<1x4x4x64xbf16, #tpu.memory_space<vmem>>, vector<1x1x4x64xbf16>
    %72 = vector.shape_cast %71 : vector<1x1x4x64xbf16> to vector<4x64xbf16>
    %73 = vector.shape_cast %70 : vector<4x64xbf16> to vector<1x1x4x64xbf16>
    tpu.vector_store %arg13[%c0_46, %c2, %c0_47, %c0_48], %73 {strides = array<i32>} : memref<1x4x4x64xbf16, #tpu.memory_space<vmem>>, vector<1x1x4x64xbf16>,
    %74 = vector.extract_strided_slice %55 {offsets = [48, 0], sizes = [16, 64], strides = [1, 1]} : vector<64x64xbf16> to vector<16x64xbf16>
    %cst_49 = arith.constant dense<0.000000e+00> : vector<4x64xf32>
    %75 = tpu.matmul %41, %74, %cst_49 {dimension_numbers = #tpu.dot_dimension_numbers<[1], [0], [0], [1], [0, 0, 1, 1], [], []>} : vector<4x16xbf16>, vector<16x64xbf16>, vector<4x64xf32> -> vector<4x64xf32>
    %76 = arith.truncf %75 : vector<4x64xf32> to vector<4x64xbf16>
    %c0_50 = arith.constant 0 : index
    %c3 = arith.constant 3 : index
    %c0_51 = arith.constant 0 : index
    %c0_52 = arith.constant 0 : index
    %77 = vector.load %arg13[%c0_50, %c3, %c0_51, %c0_52] : memref<1x4x4x64xbf16, #tpu.memory_space<vmem>>, vector<1x1x4x64xbf16>
    %78 = vector.shape_cast %77 : vector<1x1x4x64xbf16> to vector<4x64xbf16>
    %79 = vector.shape_cast %76 : vector<4x64xbf16> to vector<1x1x4x64xbf16>
    tpu.vector_store %arg13[%c0_50, %c3, %c0_51, %c0_52], %79 {strides = array<i32>} : memref<1x4x4x64xbf16, #tpu.memory_space<vmem>>, vector<1x1x4x64xbf16>,
    return
  }
  func.func @transform_0(%arg0: i32, %arg1: i32) -> (i32, i32, i32) {
    %c0_i32 = arith.constant 0 : i32
    %c0_i32_0 = arith.constant 0 : i32
    return %arg0, %c0_i32, %arg1 : i32, i32, i32
  }
  func.func @transform_1(%arg0: i32, %arg1: i32) -> (i32, i32) {
    %c0_i32 = arith.constant 0 : i32
    %c0_i32_0 = arith.constant 0 : i32
    %c0_i32_1 = arith.constant 0 : i32
    return %c0_i32, %c0_i32_0 : i32, i32
  }
  func.func @transform_2(%arg0: i32, %arg1: i32) -> (i32, i32) {
    %c0_i32 = arith.constant 0 : i32
    %c0_i32_0 = arith.constant 0 : i32
    %c0_i32_1 = arith.constant 0 : i32
    return %c0_i32, %c0_i32_0 : i32, i32
  }
  func.func @transform_3(%arg0: i32, %arg1: i32) -> (i32, i32) {
    %c0_i32 = arith.constant 0 : i32
    %c0_i32_0 = arith.constant 0 : i32
    %c0_i32_1 = arith.constant 0 : i32
    return %c0_i32, %c0_i32_0 : i32, i32
  }
  func.func @transform_4(%arg0: i32, %arg1: i32) -> (i32, i32) {
    %c0_i32 = arith.constant 0 : i32
    %c0_i32_0 = arith.constant 0 : i32
    %c0_i32_1 = arith.constant 0 : i32
    return %c0_i32, %c0_i32_0 : i32, i32
  }
  func.func @transform_5(%arg0: i32, %arg1: i32) -> (i32, i32) {
    %c0_i32 = arith.constant 0 : i32
    %c0_i32_0 = arith.constant 0 : i32
    %c0_i32_1 = arith.constant 0 : i32
    return %c0_i32, %c0_i32_0 : i32, i32
  }
  func.func @transform_6(%arg0: i32, %arg1: i32) -> (i32, i32) {
    %c0_i32 = arith.constant 0 : i32
    %c0_i32_0 = arith.constant 0 : i32
    %c0_i32_1 = arith.constant 0 : i32
    return %c0_i32, %c0_i32_0 : i32, i32
  }
  func.func @transform_7(%arg0: i32, %arg1: i32) -> (i32, i32) {
    %c0_i32 = arith.constant 0 : i32
    %c0_i32_0 = arith.constant 0 : i32
    %c0_i32_1 = arith.constant 0 : i32
    return %c0_i32, %c0_i32_0 : i32, i32
  }
  func.func @transform_8(%arg0: i32, %arg1: i32) -> (i32, i32) {
    %c0_i32 = arith.constant 0 : i32
    %c0_i32_0 = arith.constant 0 : i32
    %c0_i32_1 = arith.constant 0 : i32
    return %c0_i32, %c0_i32_0 : i32, i32
  }
  func.func @transform_9(%arg0: i32, %arg1: i32) -> (i32, i32) {
    %c0_i32 = arith.constant 0 : i32
    %c0_i32_0 = arith.constant 0 : i32
    %c0_i32_1 = arith.constant 0 : i32
    return %c0_i32, %c0_i32_0 : i32, i32
  }
  func.func @transform_10(%arg0: i32, %arg1: i32) -> (i32, i32, i32) {
    %c0_i32 = arith.constant 0 : i32
    %c0_i32_0 = arith.constant 0 : i32
    %c0_i32_1 = arith.constant 0 : i32
    return %arg0, %c0_i32, %c0_i32_0 : i32, i32, i32
  }
  func.func @transform_11(%arg0: i32, %arg1: i32) -> (i32, i32, i32, i32) {
    %c0_i32 = arith.constant 0 : i32
    %c0_i32_0 = arith.constant 0 : i32
    %c0_i32_1 = arith.constant 0 : i32
    return %arg0, %c0_i32, %c0_i32_0, %arg1 : i32, i32, i32, i32
  }
}

</mosaic_0001>

<bundles_post_ra>
// kernel: tile.33
= control target key start
LH: loop header
LB: loop body
LE: loop exit
PB: predicated region body
PF: predicated region fallthrough
CT: control target
= control target key end

     0   :  { %s22_s0 = inlined_call_operand.vmem [shape: f32[8], index: 0, kind: input, shape index: {}]   ;;  %s23_s1 = inlined_call_operand.vmem [shape: f32[4,8], index: 1, kind: output, shape index: {}]  }
   0x1   :  { %v4_v0 = vld [vmem:[%s22_s0] ss:$0 sm:$0xff] }
   0x2   :  { %5 = vst [vmem:[%s23_s1] sm:$0xf] %v4_v0 }

// kernel: eq.9
= control target key start
LH: loop header
LB: loop body
LE: loop exit
PB: predicated region body
PF: predicated region fallthrough
CT: control target
= control target key end

     0   :  { %vm7_vm0 = vcmask 64512   ;;  %s37_s8 = smov 8   ;;  %s38_s9 = smov 16   ;;  %vm13_vm1 = vcmask 261312   ;;  %vm19_vm2 = vcmask 195712   ;;  %vm25_vm3 = vcmask 130112   ;;  %s55_s0 = inlined_call_operand.vmem [shape: s32[4,8], index: 0, kind: input, shape index: {}]   ;;  %s56_s1 = inlined_call_operand.vmem [shape: s32[32], index: 1, kind: output, shape index: {}]  }
   0x1   :  { %v4_v0 = vld [vmem:[%s55_s0] sm:$0xf]  ;;  %s36_s0 = smov 24  }
   0x2   :  { %5 = vst [vmem:[#allocation1] sm:$0xf] %v4_v0 }
   0x9   :  { %v10_v1 = vld [vmem:[#allocation1 + $0x3] sm:$0x1]   ;;  %v22_v2 = vld [vmem:[#allocation1 + $0x1] sm:$0x1]   ;;  %v6_v3 = vld [vmem:[#allocation1] sm:$0x1]  }
   0xa   :  { %11 = vrot.lane.b32.xlu0 %v10_v1, %s36_s0  ;;  %23 = vrot.lane.b32.xlu1 %v22_v2, %s37_s8  ;;  %v16_v4 = vld [vmem:[#allocation1 + $0x2] sm:$0x1]   ;;  %8 = vst.msk [vmem:[#allocation0] sm:$0x1] %vm7_vm0, %v6_v3  }
   0xe   :  { %17 = vrot.lane.b32.xlu0 %v16_v4, %s38_s9 }
  0x7c   :  { %v12_v5 = vpop.permute.xlu0 %11   ;;  %v24_v6 = vpop.permute.xlu1 %23  }
  0x7d   :  { %14 = vst.msk [vmem:[#allocation0] sm:$0x1] %vm13_vm1, %v12_v5  }
  0x80   :  { %v18_v7 = vpop.permute.xlu0 %17  }
  0x81   :  { %20 = vst.msk [vmem:[#allocation0] sm:$0x1] %vm19_vm2, %v18_v7  }
  0x82   :  { %26 = vst.msk [vmem:[#allocation0] sm:$0x1] %vm25_vm3, %v24_v6  }
  0x89   :  { %v30_v8 = vld [vmem:[#allocation0] sm:$0x1] }
  0x8a   :  { %32 = vst [vmem:[%s56_s1] sm:$0x1] %v30_v8 }

// kernel: tile.38
= control target key start
LH: loop header
LB: loop body
LE: loop exit
PB: predicated region body
PF: predicated region fallthrough
CT: control target
= control target key end

     0   :  { %s28_s0 = inlined_call_operand.vmem [shape: f32[4], index: 0, kind: input, shape index: {}]   ;;  %s29_s1 = inlined_call_operand.vmem [shape: f32[16,4], index: 1, kind: output, shape index: {}]  }
   0x1   :  { %v4_v0 = vld [vmem:[%s28_s0] ss:$0 sm:$0xff] }
   0x2   :  { %5 = vst [vmem:[%s29_s1] sm:$0xff] %v4_v0  ;;  %8 = vst [vmem:[%s29_s1 + $0x8] sm:$0xff] %v4_v0 }

// kernel: tile.0
= control target key start
LH: loop header
LB: loop body
LE: loop exit
PB: predicated region body
PF: predicated region fallthrough
CT: control target
= control target key end

     0   :  { %s66_s8 = smov 125   ;;  %vm7_vm0 = vcmask 7168   ;;  %s67_s11 = smov 126   ;;  %s117_s0 = inlined_call_operand.vmem [shape: f32[4,8], index: 0, kind: input, shape index: {}]   ;;  %s118_s1 = inlined_call_operand.vmem [shape: f32[32,1], index: 1, kind: output, shape index: {}]  }
   0x1   :  { %v4_v0 = vld [vmem:[%s117_s0] sm:$0xf]  ;;  %s65_s0 = smov 127   ;;  %s68_s12 = smov 124  }
   0x2   :  { %5 = vst [vmem:[#allocation0] sm:$0xf] %v4_v0  ;;  %s69_s13 = smov 123   ;;  %s70_s14 = smov 122  }
   0x3   :  { %s71_s15 = smov 121  }
   0x9   :  { %v9_v1 = vld [vmem:[#allocation0] sm:$0xf]  }
   0xa   :  { %v21_v2 = vld [vmem:[#allocation0] sm:$0xf]   ;;  %10 = vrot.lane.b32.xlu0 %v9_v1, %s65_s0 }
   0xb   :  { %22 = vrot.lane.b32.xlu1 %v21_v2, %s66_s8  ;;  %v15_v3 = vld [vmem:[#allocation0] sm:$0xf]  }
   0xc   :  { %v27_v4 = vld [vmem:[#allocation0] sm:$0xf]  }
   0xd   :  { %v6_v5 = vld [vmem:[#allocation0] sm:$0xf]  }
   0xe   :  { %8 = vst.msk [vmem:[%s118_s1] ss:$8 sm:$0xf] %vm7_vm0, %v6_v5   ;;  %16 = vrot.lane.b32.xlu0 %v15_v3, %s67_s11  ;;  %v33_v6 = vld [vmem:[#allocation0] sm:$0xf]  }
   0xf   :  { %28 = vrot.lane.b32.xlu1 %v27_v4, %s68_s12  ;;  %v39_v7 = vld [vmem:[#allocation0] sm:$0xf]  }
  0x10   :  { %v45_v8 = vld [vmem:[#allocation0] sm:$0xf]  }
  0x12   :  { %34 = vrot.lane.b32.xlu0 %v33_v6, %s69_s13 }
  0x13   :  { %40 = vrot.lane.b32.xlu1 %v39_v7, %s70_s14 }
  0x16   :  { %46 = vrot.lane.b32.xlu0 %v45_v8, %s71_s15 }
  0x7c   :  { %v11_v9 = vpop.permute.xlu0 %10  }
  0x7d   :  { %v23_v10 = vpop.permute.xlu1 %22   ;;  %51 = vst.msk [vmem:[%s118_s1 + $0x1] ss:$8 sm:$0xf] %vm7_vm0, %v11_v9  }
  0x7e   :  { %53 = vst.msk [vmem:[%s118_s1 + $0x3] ss:$8 sm:$0xf] %vm7_vm0, %v23_v10  }
  0x80   :  { %v17_v11 = vpop.permute.xlu0 %16  }
  0x81   :  { %v29_v12 = vpop.permute.xlu1 %28   ;;  %52 = vst.msk [vmem:[%s118_s1 + $0x2] ss:$8 sm:$0xf] %vm7_vm0, %v17_v11  }
  0x82   :  { %54 = vst.msk [vmem:[%s118_s1 + $0x4] ss:$8 sm:$0xf] %vm7_vm0, %v29_v12  }
  0x84   :  { %v35_v13 = vpop.permute.xlu0 %34  }
  0x85   :  { %v41_v14 = vpop.permute.xlu1 %40   ;;  %55 = vst.msk [vmem:[%s118_s1 + $0x5] ss:$8 sm:$0xf] %vm7_vm0, %v35_v13  }
  0x86   :  { %56 = vst.msk [vmem:[%s118_s1 + $0x6] ss:$8 sm:$0xf] %vm7_vm0, %v41_v14  }
  0x88   :  { %v47_v15 = vpop.permute.xlu0 %46  }
  0x89   :  { %57 = vst.msk [vmem:[%s118_s1 + $0x7] ss:$8 sm:$0xf] %vm7_vm0, %v47_v15  }

// kernel: tile.3
= control target key start
LH: loop header
LB: loop body
LE: loop exit
PB: predicated region body
PF: predicated region fallthrough
CT: control target
= control target key end

     0   :  { %vm3_vm0 = vcmask 7168   ;;  %s64_s10 = smov 127   ;;  %s65_s15 = smov 125   ;;  %s114_s0 = inlined_call_operand.vmem [shape: f32[16,4], index: 0, kind: input, shape index: {}]   ;;  %s115_s1 = inlined_call_operand.vmem [shape: f32[64,1], index: 1, kind: output, shape index: {}]  }
   0x1   :  { %v23_v0 = vld [vmem:[%s114_s0] sm:$0xff]   ;;  %v49_v1 = vld [vmem:[%s114_s0 + $0x8] sm:$0xff]   ;;  %s63_s0 = smov 126  }
   0x2   :  { %24 = vrot.lane.b32.xlu1 %v23_v0, %s63_s0  ;;  %11 = vrot.lane.b32.xlu0 %v23_v0, %s64_s10  ;;  %4 = vst.msk [vmem:[%s115_s1] ss:$4 sm:$0xff] %vm3_vm0, %v23_v0   ;;  %50 = vst.msk [vmem:[%s115_s1 + $0x20] ss:$4 sm:$0xff] %vm3_vm0, %v49_v1  }
   0x6   :  { %31 = vrot.lane.b32.xlu1 %v49_v1, %s63_s0  ;;  %18 = vrot.lane.b32.xlu0 %v49_v1, %s64_s10 }
   0xa   :  { %44 = vrot.lane.b32.xlu1 %v49_v1, %s65_s15  ;;  %37 = vrot.lane.b32.xlu0 %v23_v0, %s65_s15 }
  0x74   :  { %v25_v2 = vpop.permute.xlu1 %24   ;;  %v12_v3 = vpop.permute.xlu0 %11  }
  0x75   :  { %54 = vst.msk [vmem:[%s115_s1 + $0x2] ss:$4 sm:$0xff] %vm3_vm0, %v25_v2   ;;  %51 = vst.msk [vmem:[%s115_s1 + $0x1] ss:$4 sm:$0xff] %vm3_vm0, %v12_v3  }
  0x78   :  { %v32_v4 = vpop.permute.xlu1 %31   ;;  %v19_v5 = vpop.permute.xlu0 %18  }
  0x79   :  { %56 = vst.msk [vmem:[%s115_s1 + $0x22] ss:$4 sm:$0xff] %vm3_vm0, %v32_v4   ;;  %53 = vst.msk [vmem:[%s115_s1 + $0x21] ss:$4 sm:$0xff] %vm3_vm0, %v19_v5  }
  0x7c   :  { %v45_v6 = vpop.permute.xlu1 %44   ;;  %v38_v7 = vpop.permute.xlu0 %37  }
  0x7d   :  { %59 = vst.msk [vmem:[%s115_s1 + $0x23] ss:$4 sm:$0xff] %vm3_vm0, %v45_v6   ;;  %57 = vst.msk [vmem:[%s115_s1 + $0x3] ss:$4 sm:$0xff] %vm3_vm0, %v38_v7  }

// kernel: mask_decoder_forward.2
= control target key start
LH: loop header
LB: loop body
LE: loop exit
PB: predicated region body
PF: predicated region fallthrough
CT: control target
= control target key end

     0   :  { %v792_v0 = vmov 0.0   ;;  %vm793_vm0 = vmmov 0   ;;  %vm85_vm1 = vcmask 261120   ;;  %vm237_vm2 = vcmask 523264   ;;  %s795_s18 = smov 8   ;;  %s1035_s1 = inlined_call_operand.vmem [shape: bf16[32,32], index: 1, kind: input, shape index: {}]   ;;  %s1036_s9 = inlined_call_operand.vmem [shape: bf16[32,64], index: 9, kind: input, shape index: {}]   ;;  %s1037_s0 = inlined_call_operand.vmem [shape: bf16[16,32], index: 0, kind: input, shape index: {}]   ;;  %s1038_s11 = inlined_call_operand.vmem [shape: bf16[64,64], index: 11, kind: input, shape index: {}]   ;;  %s1039_s2 = inlined_call_operand.vmem [shape: f32[1,32], index: 2, kind: input, shape index: {}]   ;;  %s1040_s3 = inlined_call_operand.vmem [shape: bf16[1,32,32], index: 3, kind: input, shape index: {}]   ;;  %s1041_s13 = inlined_call_operand.vmem [shape: bf16[64,1], index: 13, kind: input, shape index: {}]   ;;  %s1042_s10 = inlined_call_operand.vmem [shape: f32[1,64], index: 10, kind: input, shape index: {}]   ;;  %s1043_s5 = inlined_call_operand.vmem [shape: bf16[1,32,32], index: 5, kind: input, shape index: {}]   ;;  %s1044_s14 = inlined_call_operand.<no memory space> [shape: f32[1,1], index: 14, kind: input, shape index: {}]   ;;  %s1045_s12 = inlined_call_operand.vmem [shape: f32[1,64], index: 12, kind: input, shape index: {}]   ;;  %s1046_s4 = inlined_call_operand.vmem [shape: f32[1,1,32], index: 4, kind: input, shape index: {}]   ;;  %s1047_s7 = inlined_call_operand.vmem [shape: bf16[1,32,4], index: 7, kind: input, shape index: {}]   ;;  %s1048_s16 = inlined_call_operand.vmem [shape: f32[2,1], index: 16, kind: output, shape index: {1}]   ;;  %s1049_s6 = inlined_call_operand.vmem [shape: f32[1,1,32], index: 6, kind: input, shape index: {}]   ;;  %s1050_s15 = inlined_call_operand.vmem [shape: f32[2,4,16], index: 15, kind: output, shape index: {0}]   ;;  %s1051_s8 = inlined_call_operand.vmem [shape: f32[1,1,4], index: 8, kind: input, shape index: {}]  }
   0x1   :  { %1053 = sst [smem:[#allocation3_spill]] %s1035_s1  ;;  %703 = vmatprep.subr.bf16.mxu0 %v792_v0  ;;  %707 = vmatprep.mubr.msk.bf16.mxu0 %vm793_vm0, %v792_v0  ;;  %v776_v3 = vld [vmem:[%s1036_s9] sm:$0xff]   ;;  %v777_v5 = vld [vmem:[%s1036_s9 + $0x8] sm:$0xff]   ;;  %v780_v8 = vld [vmem:[%s1038_s11 + $0x10] sm:$0xff]   ;;  %v22_v32 = vstv %s1044_s14  ;;  %vm365_vm3 = vcmask 1024   ;;  %vm367_vm4 = vcmask 125952  }
   0x2   :  { %s1054_s23 = sld [smem:[#allocation3_spill]]  ;;  %711 = vmatprep.subr.bf16.mxu1 %v792_v0  ;;  %715 = vmatprep.mubr.msk.bf16.mxu1 %vm793_vm0, %v792_v0  ;;  %v775_v4 = vld [vmem:[%s1037_s0] sm:$0xff]   ;;  %v779_v7 = vld [vmem:[%s1038_s11 + $0x8] sm:$0xff]   ;;  %v781_v16 = vld [vmem:[%s1038_s11 + $0x18] sm:$0xff]   ;;  %23 = vst [vmem:[#allocation2] sm:$0x1] %v22_v32 }
   0x3   :  { %712 = vmatpush3.bf16.msra.mxu1 %v776_v3  ;;  %v778_v6 = vld [vmem:[%s1038_s11] sm:$0xff]   ;;  %v785_v18 = vld [vmem:[%s1041_s13 + $0x8] sm:$0xff]   ;;  %v786_v19 = vld [vmem:[%s1041_s13 + $0x10] sm:$0xff]   ;;  %368 = vst.msk [vmem:[%s1050_s15] sm:$0xf] %vm367_vm4, %v792_v0  ;;  %vm599_vm5 = vcmask 24576  }
   0x4   :  { %713 = vmatprep.subr.bf16.mxu1 %v792_v0  ;;  %v645_v9 = vld [vmem:[%s1039_s2] ss:$0 sm:$0xff]  ;;  %v783_v29 = vld [vmem:[%s1040_s3 + $0x8] sm:$0xff]   ;;  %v787_v31 = vld [vmem:[%s1041_s13 + $0x18] sm:$0xff]   ;;  %369 = vst.msk [vmem:[%s1050_s15 + $0x4] sm:$0xf] %vm367_vm4, %v792_v0 }
   0x5   :  { %v784_v17 = vld [vmem:[%s1041_s13] sm:$0xff]   ;;  %v789_v44 = vld [vmem:[%s1043_s5 + $0x8] sm:$0xff]   ;;  %vm625_vm6 = vcmask 90176   ;;  %vm616_vm7 = vcmask 57376   ;;  %vm634_vm8 = vcmask 122976  }
   0x6   :  { %v650_v20 = vld [vmem:[%s1042_s10] ss:$0 sm:$0xff]  ;;  %v791_v52 = vld [vmem:[%s1047_s7 + $0x8] sm:$0xff]  }
   0x7   :  { %714 = vmatpush3.bf16.msra.mxu1 %v777_v5  ;;  %v782_v27 = vld [vmem:[%s1040_s3] sm:$0xff]   ;;  %s797_s3 = smov 12  }
   0x8   :  { %v773_v1 = vld [vmem:[%s1054_s23] sm:$0xff]   ;;  %v774_v2 = vld [vmem:[%s1054_s23 + $0x8] sm:$0xff]   ;;  %731 = vmatprep.subr.bf16.mxu1 %v792_v0 }
   0x9   :  { %704 = vmatpush3.bf16.msra.mxu0 %v773_v1  ;;  %v654_v33 = vld [vmem:[%s1045_s12] ss:$0 sm:$0xff] }
   0xa   :  { %705 = vmatprep.subr.bf16.mxu0 %v792_v0  ;;  %v788_v40 = vld [vmem:[%s1043_s5] sm:$0xff]  }
   0xb   :  { %v666_v42 = vld [vmem:[%s1046_s4] ss:$0 sm:$0xff] }
   0xc   :  { %v790_v51 = vld [vmem:[%s1047_s7] sm:$0xff]  }
   0xd   :  { %706 = vmatpush3.bf16.msra.mxu0 %v774_v2  ;;  %v660_v53 = vld [vmem:[#allocation2] ss:$0 sm:$0xff] }
   0xe   :  { %719 = vmatprep.subr.bf16.mxu0 %v792_v0  ;;  %v670_v59 = vld [vmem:[%s1049_s6] ss:$0 sm:$0xff] }
  0x10   :  { %708 = vmatmul.mubr.msk.bf16.vlgmr.msra.gmra.mrb[0].mxu0 %vm85_vm1, %v775_v4  ;;  %v794_v4 = vmov 1966171168  }
  0x11   :  { %727 = vmatprep.mubr.msk.bf16.mxu0 %vm793_vm0, %v792_v0  ;;  %720 = vmatpush3.bf16.msra.mxu0 %v778_v6  ;;  %v576_v5 = vunpack.c.l.s4 %v794_v4  ;;  %v578_v6 = vlaneseq }
  0x12   :  { %721 = vmatprep.subr.bf16.mxu0 %v792_v0 }
  0x15   :  { %722 = vmatpush3.bf16.msra.mxu0 %v779_v7  ;;  %v577_v7 = vunpack.c.0.s8 %v576_v5 }
  0x16   :  { %723 = vmatprep.subr.bf16.mxu0 %v792_v0 }
  0x19   :  { %724 = vmatpush3.bf16.msra.mxu0 %v780_v8  ;;  %v579_v8 = vshrl.u32 %v578_v6, 7 }
  0x1a   :  { %725 = vmatprep.subr.bf16.mxu0 %v792_v0 }
  0x1d   :  { %726 = vmatpush3.bf16.msra.mxu0 %v781_v16 }
  0x1e   :  { %743 = vmatprep.subr.bf16.mxu0 %v792_v0 }
  0xe3   :  { %v123_v10 = vpop.f32.mrb[0].mxu0 }
  0xe4   :  { %v124_v11 = vadd.f32 %v645_v9, %v123_v10  ;;  %v709_v12 = vpop.f32.mrb[1].mxu0  ;;  %v674_v9 = vld [vmem:[%s1051_s8] ss:$0 sm:$0xff]  ;;  %v580_v10 = vsub.s32 %v577_v7, %v579_v8  ;;  %s796_s8 = smov 4  }
  0xe5   :  { %v126_v13 = vpop.f32.mrb[2].mxu0 }
  0xe6   :  { %v129_v14 = vpack.c.bf16 %v124_v11, %v124_v11  ;;  %v710_v15 = vpop.f32.mrb[3].mxu0 }
  0xe8   :  { %716 = vmatmul.mubr.msk.bf16.vlgmr.msra.gmra.mrb[0].mxu1 %vm85_vm1, %v129_v14  ;;  %v382_v30 = vrot.slane %v129_v14, 1 }
  0xe9   :  { %739 = vmatprep.mubr.msk.bf16.mxu1 %vm793_vm0, %v792_v0  ;;  %732 = vmatpush3.bf16.msra.mxu1 %v784_v17  ;;  %v604_v17 = vsub.s32 0, %v579_v8 }
  0xea   :  { %733 = vmatprep.subr.bf16.mxu1 %v792_v0 }
  0xed   :  { %734 = vmatpush3.bf16.msra.mxu1 %v785_v18 }
  0xee   :  { %735 = vmatprep.subr.bf16.mxu1 %v792_v0 }
  0xf1   :  { %736 = vmatpush3.bf16.msra.mxu1 %v786_v19 }
  0xf2   :  { %737 = vmatprep.subr.bf16.mxu1 %v792_v0 }
  0xf5   :  { %738 = vmatpush3.bf16.msra.mxu1 %v787_v31 }
  0xf6   :  { %751 = vmatprep.subr.bf16.mxu1 %v792_v0 }
 0x1bb   :  { %v190_v21 = vpop.f32.mrb[0].mxu1 }
 0x1bc   :  { %v191_v22 = vadd.f32 %v650_v20, %v190_v21  ;;  %v717_v23 = vpop.f32.mrb[1].mxu1 }
 0x1bd   :  { %v193_v24 = vpop.f32.mrb[2].mxu1 }
 0x1be   :  { %v196_v25 = vmax.f32 %v191_v22, 0.0  ;;  %v718_v26 = vpop.f32.mrb[3].mxu1 }
 0x1c0   :  { %v197_v28 = vpack.c.bf16 %v196_v25, %v196_v25 }
 0x1c2   :  { %728 = vmatmul.mubr.msk.bf16.vlgmr.msra.gmra.mrb[4].mxu0 %vm237_vm2, %v197_v28 }
 0x1c3   :  { %744 = vmatpush3.bf16.msra.mxu0 %v782_v27  ;;  %747 = vmatprep.mubr.msk.bf16.mxu0 %vm793_vm0, %v792_v0 }
 0x1c4   :  { %745 = vmatprep.subr.bf16.mxu0 %v792_v0 }
 0x1c7   :  { %746 = vmatpush3.bf16.msra.mxu0 %v783_v29 }
 0x1c8   :  { %759 = vmatprep.subr.bf16.mxu0 %v792_v0 }
 0x1ca   :  { %748 = vmatmul.mubr.msk.bf16.vlgmr.msra.gmra.mrb[8].mxu0 %vm85_vm1, %v382_v30 }
 0x1cb   :  { %763 = vmatprep.mubr.msk.bf16.mxu0 %vm793_vm0, %v792_v0  ;;  %760 = vmatpush3.bf16.msra.mxu0 %v790_v51 }
 0x1cc   :  { %761 = vmatprep.subr.bf16.mxu0 %v792_v0 }
 0x1cf   :  { %762 = vmatpush3.bf16.msra.mxu0 %v791_v52 }
 0x295   :  { %v275_v34 = vpop.f32.mrb[4].mxu0 }
 0x296   :  { %v276_v35 = vadd.f32 %v654_v33, %v275_v34  ;;  %v729_v36 = vpop.f32.mrb[5].mxu0 }
 0x297   :  { %v278_v37 = vpop.f32.mrb[6].mxu0 }
 0x298   :  { %v281_v38 = vmax.f32 %v276_v35, 0.0  ;;  %v730_v39 = vpop.f32.mrb[7].mxu0 }
 0x29a   :  { %v282_v41 = vpack.c.bf16 %v281_v38, %v281_v38 }
 0x29c   :  { %740 = vmatmul.mubr.msk.bf16.vlgmr.msra.gmra.mrb[4].mxu1 %vm237_vm2, %v282_v41 }
 0x29d   :  { %752 = vmatpush3.bf16.msra.mxu1 %v788_v40  ;;  %v432_v43 = vpop.f32.mrb[8].mxu0  ;;  %755 = vmatprep.mubr.msk.bf16.mxu1 %vm793_vm0, %v792_v0 }
 0x29e   :  { %v433_v45 = vadd.f32 %v666_v42, %v432_v43  ;;  %v749_v46 = vpop.f32.mrb[9].mxu0  ;;  %753 = vmatprep.subr.bf16.mxu1 %v792_v0 }
 0x29f   :  { %v435_v47 = vpop.f32.mrb[10].mxu0 }
 0x2a0   :  { %v438_v48 = vmax.f32 %v433_v45, 0.0  ;;  %v750_v49 = vpop.f32.mrb[11].mxu0 }
 0x2a1   :  { %754 = vmatpush3.bf16.msra.mxu1 %v789_v44 }
 0x2a2   :  { %v439_v50 = vpack.c.bf16 %v438_v48, %v438_v48 }
 0x2a4   :  { %756 = vmatmul.mubr.msk.bf16.vlgmr.msra.gmra.mrb[8].mxu1 %vm85_vm1, %v439_v50 }
 0x36f   :  { %v359_v54 = vpop.f32.mrb[4].mxu1 }
 0x370   :  { %v360_v55 = vadd.f32 %v660_v53, %v359_v54  ;;  %v741_v56 = vpop.f32.mrb[5].mxu1 }
 0x371   :  { %v362_v57 = vpop.f32.mrb[6].mxu1 }
 0x372   :  { %366 = vst.msk [vmem:[%s1048_s16] sm:$0x3] %vm365_vm3, %v360_v55  ;;  %v742_v58 = vpop.f32.mrb[7].mxu1 }
 0x377   :  { %v500_v60 = vpop.f32.mrb[8].mxu1 }
 0x378   :  { %v501_v61 = vadd.f32 %v670_v59, %v500_v60  ;;  %v757_v62 = vpop.f32.mrb[9].mxu1 }
 0x379   :  { %v503_v63 = vpop.f32.mrb[10].mxu1 }
 0x37a   :  { %v506_v1 = vmax.f32 %v501_v61, 0.0  ;;  %v758_v2 = vpop.f32.mrb[11].mxu1 }
 0x37c   :  { %v507_v3 = vpack.c.bf16 %v506_v1, %v506_v1 }
 0x37e   :  { %764 = vmatmul.mubr.msk.bf16.vlgmr.msra.gmra.mrb[12].mxu0 %vm85_vm1, %v507_v3 }
 0x451   :  { %v568_v11 = vpop.f32.mrb[12].mxu0 }
 0x452   :  { %v569_v12 = vadd.f32 %v674_v9, %v568_v11  ;;  %v765_v13 = vpop.f32.mrb[13].mxu0 }
 0x453   :  { %v571_v14 = vpop.f32.mrb[14].mxu0 }
 0x454   :  { %v581_v15 = vrot.slane %v569_v12, %v580_v10  ;;  %v766_v16 = vpop.f32.mrb[15].mxu0 }
 0x456   :  { %v582_v18 = vcombine.high %v581_v15, %v581_v15  ;;  %v589_v0 = vrot.slane %v581_v15, %v580_v10 }
 0x458   :  { %v605_v19 = vrot.slane %v589_v0, %v604_v17  ;;  %v596_v20 = vrot.slane %v582_v18, %v580_v10  ;;  %600 = vst.msk [vmem:[%s1050_s15] sm:$0x1] %vm599_vm5, %v589_v0 }
 0x45a   :  { %619 = vrot.lane.b32.xlu1 %v605_v19, %s795_s18  ;;  %610 = vrot.lane.b32.xlu0 %v605_v19, %s796_s8  ;;  %601 = vst.msk [vmem:[%s1050_s15 + $0x4] sm:$0x1] %vm599_vm5, %v596_v20  ;;  %v609_v21 = vrot.slane %v596_v20, %v604_v17 }
 0x45e   :  { %621 = vrot.lane.b32.xlu1 %v609_v21, %s795_s18  ;;  %612 = vrot.lane.b32.xlu0 %v609_v21, %s796_s8 }
 0x462   :  { %630 = vrot.lane.b32.xlu1 %v609_v21, %s797_s3  ;;  %628 = vrot.lane.b32.xlu0 %v605_v19, %s797_s3 }
 0x4cc   :  { %v620_v22 = vpop.permute.xlu1 %619  ;;  %v611_v23 = vpop.permute.xlu0 %610 }
 0x4cd   :  { %626 = vst.msk [vmem:[%s1050_s15 + $0x2] sm:$0x1] %vm625_vm6, %v620_v22 }
 0x4ce   :  { %617 = vst.msk [vmem:[%s1050_s15 + $0x1] sm:$0x1] %vm616_vm7, %v611_v23 }
 0x4d0   :  { %v622_v24 = vpop.permute.xlu1 %621  ;;  %v613_v25 = vpop.permute.xlu0 %612 }
 0x4d1   :  { %627 = vst.msk [vmem:[%s1050_s15 + $0x6] sm:$0x1] %vm625_vm6, %v622_v24 }
 0x4d2   :  { %618 = vst.msk [vmem:[%s1050_s15 + $0x5] sm:$0x1] %vm616_vm7, %v613_v25 }
 0x4d4   :  { %v631_v26 = vpop.permute.xlu1 %630  ;;  %v629_v27 = vpop.permute.xlu0 %628 }
 0x4d5   :  { %636 = vst.msk [vmem:[%s1050_s15 + $0x7] sm:$0x1] %vm634_vm8, %v631_v26  ;;  %635 = vst.msk [vmem:[%s1050_s15 + $0x3] sm:$0x1] %vm634_vm8, %v629_v27 }

// kernel: mask_decoder_forward.3
= control target key start
LH: loop header
LB: loop body
LE: loop exit
PB: predicated region body
PF: predicated region fallthrough
CT: control target
= control target key end

     0   :  { %s1629_s17 = smov 0   ;;  %s1631_s18 = smov 0   ;;  %s1804_s0 = inlined_call_operand.vmem [shape: bf16[2,32,64], index: 0, kind: input, shape index: {}]   ;;  %s1805_s1 = inlined_call_operand.vmem [shape: bf16[32,32], index: 1, kind: input, shape index: {}]   ;;  %s1806_s2 = inlined_call_operand.vmem [shape: f32[32,1], index: 2, kind: input, shape index: {}]   ;;  %s1807_s3 = inlined_call_operand.vmem [shape: bf16[32,32], index: 3, kind: input, shape index: {}]   ;;  %s1808_s4 = inlined_call_operand.vmem [shape: f32[32,1], index: 4, kind: input, shape index: {}]   ;;  %s1809_s5 = inlined_call_operand.vmem [shape: bf16[32,32], index: 5, kind: input, shape index: {}]   ;;  %s1810_s6 = inlined_call_operand.vmem [shape: f32[32,1], index: 6, kind: input, shape index: {}]   ;;  %s1811_s7 = inlined_call_operand.vmem [shape: f32[32,1], index: 7, kind: input, shape index: {}]   ;;  %s1812_s8 = inlined_call_operand.vmem [shape: bf16[64,32], index: 8, kind: input, shape index: {}]   ;;  %s1813_s9 = inlined_call_operand.vmem [shape: f32[64,1], index: 9, kind: input, shape index: {}]   ;;  %s1814_s10 = inlined_call_operand.vmem [shape: bf16[2,4,16], index: 10, kind: input, shape index: {}]   ;;  %s1815_s11 = inlined_call_operand.vmem [shape: bf16[2,4,4,64], index: 11, kind: output, shape index: {}]  }
   0x1   :  { %s1633_s19 = smov 0  }
   0x2 LB: > { %s33_s20 = sadd.s32 1, %s1560_s18  ;;  %p1330_p0 = scmp.ge.s32.totalorder %s1564_s19, 1  ;;  %s1564_s19 = sphi %s1633_s19, %s21_s19   ;;  %s1560_s18 = sphi %s1631_s18, %s1817_s18   ;;  %s1556_s17 = sphi %s1629_s17, %s1816_s17  }
   0x3   : > { %p35_p1 = scmp.ge.s32.totalorder %s33_s20, 2  ;;  %p365_p2 = scmp.lt.s32.totalorder %s1564_s19, 3 }
   0x5   : > { %s1819_s20 = smov (%p35_p1, %s33_s20), 0  ;;  %p366_p3 = pnand %p1330_p0, %p365_p2 }
   0x6   : > { %p415_p4 = scmp.lt.s32.totalorder (!%p366_p3), %s1556_s17, 1  ;;  %v1500_v0 = vld [vmem:[%s1805_s1] sm:$0xff] (!%p366_p3)   ;;  %vm490_vm0 = vcmask (!%p366_p3), 261120   ;;  %v446_v2 = vld [vmem:[%s1806_s2 + $0x10] sm:$0xff] (!%p366_p3)  ;;  %v1566_v3 = vmov (!%p366_p3), 0   ;;  %v445_v4 = vld [vmem:[%s1806_s2 + $0x8] sm:$0xff] (!%p366_p3) }
   0x7   : > { %369 = sbr.rel (%p366_p3) target bundleno = 1440 (0x5a0), region = 64  ;;  %1405 = vmatprep.mubr.msk.bf16.mxu0 (!%p366_p3), %vm490_vm0, %v1500_v0  ;;  %v444_v1 = vld [vmem:[%s1806_s2] sm:$0xff] (!%p366_p3)  ;;  %1496 = vset.pattern.permute.xlu0 (!%p366_p3), %v1566_v3  ;;  %v447_v5 = vld [vmem:[%s1806_s2 + $0x18] sm:$0xff] (!%p366_p3)  ;;  %v553_v9 = vld [vmem:[%s1808_s4 + $0x8] sm:$0xff] (!%p366_p3)  ;;  %vm1568_vm1 = vmmov (!%p366_p3), 0   ;;  %vm1055_vm2 = vcmask (!%p366_p3), 130048  }
   0x8   : > { %1497 = vset.pattern.permute.xlu1 (!%p366_p3), %v1566_v3  ;;  %450 = vperm.xlu0 (!%p366_p3), %1496, %v444_v1   ;;  %v552_v8 = vld [vmem:[%s1808_s4] sm:$0xff] (!%p366_p3)  ;;  %v1501_v10 = vld [vmem:[%s1805_s1 + $0x8] sm:$0xff] (!%p366_p3)   ;;  %v554_v11 = vld [vmem:[%s1808_s4 + $0x10] sm:$0xff] (!%p366_p3)  ;;  %vm1100_vm3 = vcmask (!%p366_p3), 517120  }
   0x9   : > { %460 = vperm.xlu1 (!%p366_p3), %1497, %v446_v2   ;;  %v555_v12 = vld [vmem:[%s1808_s4 + $0x18] sm:$0xff] (!%p366_p3)  ;;  %v722_v13 = vld [vmem:[%s1810_s6] sm:$0xff] (!%p366_p3)  ;;  %v723_v14 = vld [vmem:[%s1810_s6 + $0x8] sm:$0xff] (!%p366_p3) }
   0xa   : > { %v807_v15 = vld [vmem:[%s1811_s7] sm:$0xff] (!%p366_p3)  ;;  %v808_v16 = vld [vmem:[%s1811_s7 + $0x8] sm:$0xff] (!%p366_p3)  ;;  %v724_v17 = vld [vmem:[%s1810_s6 + $0x10] sm:$0xff] (!%p366_p3) }
   0xb   : > { %v725_v18 = vld [vmem:[%s1810_s6 + $0x18] sm:$0xff] (!%p366_p3)  ;;  %v809_v19 = vld [vmem:[%s1811_s7 + $0x10] sm:$0xff] (!%p366_p3)  ;;  %v866_v21 = vld [vmem:[%s1813_s9] sm:$0xff] (!%p366_p3) }
   0xc   : > { %455 = vperm.xlu0 (!%p366_p3), %1496, %v445_v4   ;;  %v810_v20 = vld [vmem:[%s1811_s7 + $0x18] sm:$0xff] (!%p366_p3)  ;;  %v867_v22 = vld [vmem:[%s1813_s9 + $0x8] sm:$0xff] (!%p366_p3)  ;;  %v868_v23 = vld [vmem:[%s1813_s9 + $0x10] sm:$0xff] (!%p366_p3) }
   0xd   : > { %465 = vperm.xlu1 (!%p366_p3), %1497, %v447_v5   ;;  %v869_v24 = vld [vmem:[%s1813_s9 + $0x18] sm:$0xff] (!%p366_p3)  ;;  %v870_v25 = vld [vmem:[%s1813_s9 + $0x20] sm:$0xff] (!%p366_p3)  ;;  %v871_v26 = vld [vmem:[%s1813_s9 + $0x28] sm:$0xff] (!%p366_p3) }
   0xe   : > { %s1821_s17 = smov (!%p415_p4, %s1556_s17), 1  ;;  %v872_v27 = vld [vmem:[%s1813_s9 + $0x30] sm:$0xff]  ;;  %v873_v28 = vld [vmem:[%s1813_s9 + $0x38] sm:$0xff]  ;;  %v1502_v29 = vld [vmem:[%s1807_s3] sm:$0xff]  }
   0xf   : > { %s1369_s27 = sshll.u32 %s1821_s17, 4  ;;  %1413 = vmatprep.mubr.msk.bf16.mxu1 %vm490_vm0, %v1502_v29  ;;  %v1503_v44 = vld [vmem:[%s1807_s3 + $0x8] sm:$0xff]   ;;  %v1504_v45 = vld [vmem:[%s1809_s5] sm:$0xff]   ;;  %s1333_s14 = sshll.u32 %s1821_s17, 1 }
  0x10   : > { %s422_s30 = scalar_lea.vmem %s1804_s0, %s1369_s27  ;;  %558 = vperm.xlu0 %1496, %v552_v8   ;;  %v1505_v60 = vld [vmem:[%s1809_s5 + $0x8] sm:$0xff]   ;;  %s426_s21 = scalar_lea.vmem %s1814_s10, %s1333_s14 }
  0x11   : > { %v1498_v6 = vld [vmem:[%s422_s30] sm:$0xff]   ;;  %v1499_v7 = vld [vmem:[%s422_s30 + $0x8] sm:$0xff]   ;;  %563 = vperm.xlu1 %1497, %v553_v9   ;;  %s1370_s22 = sshll.u32 %s1821_s17, 3 }
  0x12   : > { %1401 = vmatprep.subr.bf16.mxu0 %v1498_v6  ;;  %s434_s25 = scalar_lea.vmem %s1815_s11, %s1370_s22 }
  0x13   : > { %1402 = vmatpush3.bf16.msra.mxu0 %v1498_v6 }
  0x14   : > { %1403 = vmatprep.subr.bf16.mxu0 %v1499_v7  ;;  %568 = vperm.xlu0 %1496, %v554_v11   ;;  %v1506_v11 = vld [vmem:[%s1812_s8] sm:$0xff]  }
  0x15   : > { %573 = vperm.xlu1 %1497, %v555_v12  }
  0x17   : > { %1404 = vmatpush3.bf16.msra.mxu0 %v1499_v7 }
  0x18   : > { %785 = vperm.xlu0 %1496, %v722_v13  }
  0x19   : > { %790 = vperm.xlu1 %1497, %v723_v14  }
  0x1a   : > { %1406 = vmatmul.mubr.msk.bf16.vlgmr.msra.gmra.mrb[0].mxu0 %vm490_vm0, %v1501_v10 }
  0x1b   : > { %1421 = vmatprep.mubr.msk.bf16.mxu0 %vm490_vm0, %v1504_v45 }
  0x1c   : > { %813 = vperm.xlu0 %1496, %v807_v15  }
  0x1d   : > { %818 = vperm.xlu1 %1497, %v808_v16  }
  0x20   : > { %795 = vperm.xlu0 %1496, %v724_v17  }
  0x21   : > { %800 = vperm.xlu1 %1497, %v725_v18  }
  0x24   : > { %823 = vperm.xlu0 %1496, %v809_v19  }
  0x25   : > { %828 = vperm.xlu1 %1497, %v810_v20  }
  0x28   : > { %876 = vperm.xlu0 %1496, %v866_v21  }
  0x29   : > { %881 = vperm.xlu1 %1497, %v867_v22  }
  0x2c   : > { %886 = vperm.xlu0 %1496, %v868_v23  }
  0x2d   : > { %891 = vperm.xlu1 %1497, %v869_v24  }
  0x30   : > { %896 = vperm.xlu0 %1496, %v870_v25  }
  0x31   : > { %901 = vperm.xlu1 %1497, %v871_v26  }
  0x34   : > { %906 = vperm.xlu0 %1496, %v872_v27  }
  0x35   : > { %911 = vperm.xlu1 %1497, %v873_v28  }
  0x87   : > { %v451_v31 = vpop.permute.xlu0 %450 }
  0x88   : > { %v461_v30 = vpop.permute.xlu1 %460 }
  0x8b   : > { %v456_v36 = vpop.permute.xlu0 %455 }
  0x8c   : > { %v466_v34 = vpop.permute.xlu1 %465 }
  0x8f   : > { %v559_v47 = vpop.permute.xlu0 %558 }
  0x90   : > { %v564_v46 = vpop.permute.xlu1 %563 }
  0x93   : > { %v569_v56 = vpop.permute.xlu0 %568 }
  0x94   : > { %v574_v51 = vpop.permute.xlu1 %573 }
  0x97   : > { %v786_v12 = vpop.permute.xlu0 %785 }
  0x98   : > { %v791_v14 = vpop.permute.xlu1 %790 }
  0x9b   : > { %v814_v22 = vpop.permute.xlu0 %813 }
  0x9c   : > { %v819_v23 = vpop.permute.xlu1 %818 }
  0x9f   : > { %v796_v24 = vpop.permute.xlu0 %795 }
  0xa0   : > { %v801_v26 = vpop.permute.xlu1 %800 }
  0xed   : > { %v1407_v32 = vpop.f32.mrb[0].mxu0 }
  0xee   : > { %v531_v33 = vpop.f32.mrb[1].mxu0  ;;  %v540_v37 = vadd.f32 %v1407_v32, %v461_v30 }
  0xef   : > { %v1408_v35 = vpop.f32.mrb[2].mxu0  ;;  %v532_v40 = vadd.f32 %v531_v33, %v451_v31 }
  0xf0   : > { %v543_v38 = vadd.f32 %v1408_v35, %v466_v34  ;;  %v534_v39 = vpop.f32.mrb[3].mxu0  ;;  %v824_v34 = vpop.permute.xlu0 %823 }
  0xf1   : > { %v535_v41 = vadd.f32 %v534_v39, %v456_v36  ;;  %v829_v39 = vpop.permute.xlu1 %828 }
  0xf2   : > { %v551_v42 = vpack.c.bf16 %v543_v38, %v540_v37 }
  0xf3   : > { %v550_v43 = vpack.c.bf16 %v535_v41, %v532_v40 }
  0xf5   : > { %1409 = vmatprep.subr.bf16.mxu1 %v550_v43 }
  0xf6   : > { %1410 = vmatpush3.bf16.msra.mxu1 %v550_v43 }
  0xf7   : > { %1411 = vmatprep.subr.bf16.mxu1 %v551_v42 }
  0xfa   : > { %1412 = vmatpush3.bf16.msra.mxu1 %v551_v42 }
  0xfd   : > { %1414 = vmatmul.mubr.msk.bf16.vlgmr.msra.gmra.mrb[0].mxu1 %vm490_vm0, %v1503_v44 }
  0xfe   : > { %1429 = vmatprep.mubr.msk.bf16.mxu1 %vm490_vm0, %v1504_v45 }
 0x1d0   : > { %v1415_v48 = vpop.f32.mrb[0].mxu1 }
 0x1d1   : > { %v626_v49 = vpop.f32.mrb[1].mxu1  ;;  %v635_v57 = vadd.f32 %v1415_v48, %v569_v56 }
 0x1d2   : > { %v1416_v50 = vpop.f32.mrb[2].mxu1  ;;  %v627_v53 = vadd.f32 %v626_v49, %v559_v47 }
 0x1d3   : > { %v629_v52 = vpop.f32.mrb[3].mxu1  ;;  %v638_v54 = vadd.f32 %v1416_v50, %v574_v51 }
 0x1d4   : > { %v630_v55 = vadd.f32 %v629_v52, %v564_v46 }
 0x1d5   : > { %v646_v59 = vpack.c.bf16 %v638_v54, %v635_v57 }
 0x1d6   : > { %v645_v58 = vpack.c.bf16 %v630_v55, %v627_v53 }
 0x1d8   : > { %1417 = vmatprep.subr.bf16.mxu0 %v645_v58 }
 0x1d9   : > { %1418 = vmatpush3.bf16.msra.mxu0 %v645_v58 }
 0x1da   : > { %1419 = vmatprep.subr.bf16.mxu0 %v646_v59 }
 0x1dd   : > { %1420 = vmatpush3.bf16.msra.mxu0 %v646_v59 }
 0x1e0   : > { %1422 = vmatmul.mubr.msk.bf16.vlgmr.msra.gmra.mrb[4].mxu0 %vm490_vm0, %v1505_v60 }
 0x1e1   : > { %1437 = vmatprep.mubr.msk.bf16.mxu0 %vm490_vm0, %v1506_v11 }
 0x2b3   : > { %v1423_v61 = vpop.f32.mrb[4].mxu0 }
 0x2b4   : > { %v697_v62 = vpop.f32.mrb[5].mxu0  ;;  %v714_v3 = vsub.f32 %v635_v57, %v1423_v61 }
 0x2b5   : > { %v712_v63 = vsub.f32 %v627_v53, %v697_v62  ;;  %v1424_v0 = vpop.f32.mrb[6].mxu0 }
 0x2b6   : > { %v715_v1 = vsub.f32 %v638_v54, %v1424_v0  ;;  %v700_v2 = vpop.f32.mrb[7].mxu0  ;;  %v718_v8 = vmul.f32 %v714_v3, %v714_v3 }
 0x2b7   : > { %v713_v4 = vsub.f32 %v630_v55, %v700_v2  ;;  %v716_v5 = vmul.f32 %v712_v63, %v712_v63  ;;  %v1507_v2 = vld [vmem:[%s1812_s8 + $0x8] sm:$0xff]  }
 0x2b8   : > { %v719_v6 = vmul.f32 %v715_v1, %v715_v1 }
 0x2b9   : > { %v717_v7 = vmul.f32 %v713_v4, %v713_v4 }
 0x2ba   : > { %v721_v10 = vpack.c.bf16 %v719_v6, %v718_v8  ;;  %v877_v6 = vpop.permute.xlu0 %876 }
 0x2bb   : > { %v720_v9 = vpack.c.bf16 %v717_v7, %v716_v5  ;;  %v1567_v5 = vmov 0.0   ;;  %v882_v7 = vpop.permute.xlu1 %881 }
 0x2bd   : > { %1425 = vmatprep.subr.bf16.mxu1 %v720_v9 }
 0x2be   : > { %1426 = vmatpush3.bf16.msra.mxu1 %v720_v9  ;;  %v887_v8 = vpop.permute.xlu0 %886 }
 0x2bf   : > { %1427 = vmatprep.subr.bf16.mxu1 %v721_v10  ;;  %v892_v9 = vpop.permute.xlu1 %891 }
 0x2c2   : > { %1428 = vmatpush3.bf16.msra.mxu1 %v721_v10 }
 0x2c3   : > { %1445 = vmatprep.subr.bf16.mxu1 %v1567_v5 }
 0x2c5   : > { %1430 = vmatmul.mubr.msk.bf16.vlgmr.msra.gmra.mrb[4].mxu1 %vm490_vm0, %v1505_v60 }
 0x2c6   : > { %1447 = vmatprep.mubr.msk.bf16.mxu1 %vm1568_vm1, %v1567_v5 }
 0x398   : > { %v1431_v13 = vpop.f32.mrb[4].mxu1 }
 0x399   : > { %v769_v15 = vadd.f32 1e-06, %v1431_v13  ;;  %v760_v16 = vpop.f32.mrb[5].mxu1  ;;  %v897_v13 = vpop.permute.xlu0 %896 }
 0x39a   : > { %v761_v17 = vadd.f32 1e-06, %v760_v16  ;;  %v1432_v18 = vpop.f32.mrb[6].mxu1 }
 0x39b   : > { %1510 = vrsqrt.f32 %v769_v15  ;;  %v772_v19 = vadd.f32 1e-06, %v1432_v18  ;;  %v763_v20 = vpop.f32.mrb[7].mxu1 }
 0x39c   : > { %1512 = vrsqrt.f32 %v761_v17  ;;  %v764_v21 = vadd.f32 1e-06, %v763_v20 }
 0x39d   : > { %1514 = vrsqrt.f32 %v772_v19  ;;  %v902_v19 = vpop.permute.xlu1 %901 }
 0x39e   : > { %1516 = vrsqrt.f32 %v764_v21 }
 0x3a5   : > { %v1511_v25 = vpop.eup %1510 }
 0x3a6   : > { %v1513_v27 = vpop.eup %1512  ;;  %v781_v28 = vmul.f32 %v1511_v25, %v714_v3  ;;  %v1508_v3 = vld [vmem:[%s1812_s8 + $0x10] sm:$0xff]  }
 0x3a7   : > { %v1515_v29 = vpop.eup %1514  ;;  %v779_v30 = vmul.f32 %v1513_v27, %v712_v63 }
 0x3a8   : > { %v1517_v31 = vpop.eup %1516  ;;  %v782_v32 = vmul.f32 %v1515_v29, %v715_v1  ;;  %v805_v33 = vmul.f32 %v796_v24, %v781_v28  ;;  %v907_v24 = vpop.permute.xlu0 %906 }
 0x3a9   : > { %v780_v35 = vmul.f32 %v1517_v31, %v713_v4  ;;  %v803_v36 = vmul.f32 %v786_v12, %v779_v30  ;;  %v1509_v4 = vld [vmem:[%s1812_s8 + $0x18] sm:$0xff]   ;;  %v912_v28 = vpop.permute.xlu1 %911 }
 0x3aa   : > { %v806_v37 = vmul.f32 %v801_v26, %v782_v32  ;;  %v833_v38 = vadd.f32 %v824_v34, %v805_v33 }
 0x3ab   : > { %v804_v40 = vmul.f32 %v791_v14, %v780_v35  ;;  %v831_v41 = vadd.f32 %v814_v22, %v803_v36 }
 0x3ac   : > { %v834_v42 = vadd.f32 %v829_v39, %v806_v37  ;;  %v841_v43 = vmul.f32 0.70710677, %v833_v38  ;;  %v837_v54 = vmul.f32 0.5, %v833_v38 }
 0x3ad   : > { %v832_v44 = vadd.f32 %v819_v23, %v804_v40  ;;  %v839_v45 = vmul.f32 0.70710677, %v831_v41  ;;  %v835_v57 = vmul.f32 0.5, %v831_v41 }
 0x3ae   : > { %v842_v46 = vmul.f32 0.70710677, %v834_v42  ;;  %1518 = verf.f32 %v841_v43  ;;  %v838_v55 = vmul.f32 0.5, %v834_v42 }
 0x3af   : > { %v840_v47 = vmul.f32 0.70710677, %v832_v44  ;;  %1520 = verf.f32 %v839_v45  ;;  %v836_v58 = vmul.f32 0.5, %v832_v44 }
 0x3b0   : > { %1522 = verf.f32 %v842_v46 }
 0x3b1   : > { %1524 = verf.f32 %v840_v47 }
 0x3b8   : > { %v1519_v48 = vpop.eup %1518 }
 0x3b9   : > { %v1521_v49 = vpop.eup %1520  ;;  %v849_v50 = vadd.f32 1.0, %v1519_v48 }
 0x3ba   : > { %v1523_v51 = vpop.eup %1522  ;;  %v847_v52 = vadd.f32 1.0, %v1521_v49 }
 0x3bb   : > { %v1525_v53 = vpop.eup %1524  ;;  %v850_v56 = vadd.f32 1.0, %v1523_v51  ;;  %v853_v60 = vmul.f32 %v849_v50, %v837_v54 }
 0x3bc   : > { %v848_v59 = vadd.f32 1.0, %v1525_v53  ;;  %v851_v62 = vmul.f32 %v847_v52, %v835_v57 }
 0x3bd   : > { %v854_v61 = vmul.f32 %v850_v56, %v838_v55 }
 0x3be   : > { %v852_v63 = vmul.f32 %v848_v59, %v836_v58 }
 0x3bf   : > { %v856_v0 = vpack.c.bf16 %v854_v61, %v853_v60  ;;  %v857_v61 = vld [vmem:[%s426_s21] sm:$0x3] }
 0x3c0   : > { %v855_v1 = vpack.c.bf16 %v852_v63, %v851_v62 }
 0x3c2   : > { %1433 = vmatprep.subr.bf16.mxu0 %v855_v1 }
 0x3c3   : > { %1434 = vmatpush3.bf16.msra.mxu0 %v855_v1 }
 0x3c4   : > { %1435 = vmatprep.subr.bf16.mxu0 %v856_v0 }
 0x3c7   : > { %1436 = vmatpush3.bf16.msra.mxu0 %v856_v0 }
 0x3c8   : > { %1457 = vmatprep.subr.bf16.mxu0 %v1567_v5 }
 0x3ca   : > { %1438 = vmatmul.mubr.msk.bf16.vlgmr.msra.gmra.mrb[8].mxu0 %vm490_vm0, %v1507_v2 }
 0x3cb   : > { %1441 = vmatprep.mubr.msk.bf16.mxu0 %vm490_vm0, %v1508_v3 }
 0x3d2   : > { %1442 = vmatmul.mubr.msk.bf16.gmra.mrb[12].mxu0 %vm490_vm0, %v1509_v4 }
 0x3d3   : > { %1459 = vmatprep.mubr.msk.bf16.mxu0 %vm1568_vm1, %v1567_v5 }
 0x49d   : > { %v1439_v10 = vpop.f32.mrb[8].mxu0 }
 0x49e   : > { %v989_v11 = vadd.f32 %v1439_v10, %v887_v8  ;;  %v980_v12 = vpop.f32.mrb[9].mxu0 }
 0x49f   : > { %v981_v14 = vadd.f32 %v980_v12, %v877_v6  ;;  %v1440_v15 = vpop.f32.mrb[10].mxu0 }
 0x4a0   : > { %v1021_v16 = vmul.f32 0.70710677, %v989_v11  ;;  %v992_v17 = vadd.f32 %v1440_v15, %v892_v9  ;;  %v983_v18 = vpop.f32.mrb[11].mxu0  ;;  %v1013_v44 = vmul.f32 0.5, %v989_v11 }
 0x4a1   : > { %v1019_v20 = vmul.f32 0.70710677, %v981_v14  ;;  %v984_v21 = vadd.f32 %v983_v18, %v882_v7  ;;  %v1011_v47 = vmul.f32 0.5, %v981_v14 }
 0x4a2   : > { %1526 = verf.f32 %v1021_v16  ;;  %v1022_v22 = vmul.f32 0.70710677, %v992_v17  ;;  %v1014_v45 = vmul.f32 0.5, %v992_v17 }
 0x4a3   : > { %1528 = verf.f32 %v1019_v20  ;;  %v1020_v23 = vmul.f32 0.70710677, %v984_v21  ;;  %v1012_v48 = vmul.f32 0.5, %v984_v21 }
 0x4a4   : > { %1530 = verf.f32 %v1022_v22 }
 0x4a5   : > { %1532 = verf.f32 %v1020_v23  ;;  %v1443_v25 = vpop.f32.mrb[12].mxu0 }
 0x4a6   : > { %v1005_v26 = vadd.f32 %v1443_v25, %v907_v24  ;;  %v996_v27 = vpop.f32.mrb[13].mxu0 }
 0x4a7   : > { %v997_v29 = vadd.f32 %v996_v27, %v897_v13  ;;  %v1444_v30 = vpop.f32.mrb[14].mxu0 }
 0x4a8   : > { %v1025_v31 = vmul.f32 0.70710677, %v1005_v26  ;;  %v1008_v32 = vadd.f32 %v1444_v30, %v912_v28  ;;  %v999_v33 = vpop.f32.mrb[15].mxu0  ;;  %v1017_v63 = vmul.f32 0.5, %v1005_v26 }
 0x4a9   : > { %v1023_v34 = vmul.f32 0.70710677, %v997_v29  ;;  %v1000_v35 = vadd.f32 %v999_v33, %v902_v19  ;;  %v1015_v2 = vmul.f32 0.5, %v997_v29 }
 0x4aa   : > { %1534 = verf.f32 %v1025_v31  ;;  %v1026_v36 = vmul.f32 0.70710677, %v1008_v32  ;;  %v1018_v0 = vmul.f32 0.5, %v1008_v32 }
 0x4ab   : > { %1536 = verf.f32 %v1023_v34  ;;  %v1024_v37 = vmul.f32 0.70710677, %v1000_v35  ;;  %v1016_v3 = vmul.f32 0.5, %v1000_v35 }
 0x4ac   : > { %v1527_v38 = vpop.eup %1526  ;;  %1538 = verf.f32 %v1026_v36 }
 0x4ad   : > { %v1529_v39 = vpop.eup %1528  ;;  %v1037_v40 = vadd.f32 1.0, %v1527_v38  ;;  %1540 = verf.f32 %v1024_v37 }
 0x4ae   : > { %v1531_v41 = vpop.eup %1530  ;;  %v1035_v42 = vadd.f32 1.0, %v1529_v39 }
 0x4af   : > { %v1533_v43 = vpop.eup %1532  ;;  %v1038_v46 = vadd.f32 1.0, %v1531_v41  ;;  %v1045_v50 = vmul.f32 %v1037_v40, %v1013_v44 }
 0x4b0   : > { %v1036_v49 = vadd.f32 1.0, %v1533_v43  ;;  %v1043_v52 = vmul.f32 %v1035_v42, %v1011_v47 }
 0x4b1   : > { %v1046_v51 = vmul.f32 %v1038_v46, %v1014_v45 }
 0x4b2   : > { %v1044_v53 = vmul.f32 %v1036_v49, %v1012_v48 }
 0x4b3   : > { %v1052_v54 = vpack.c.bf16 %v1046_v51, %v1045_v50 }
 0x4b4   : > { %v1535_v55 = vpop.eup %1534  ;;  %v1051_v56 = vpack.c.bf16 %v1044_v53, %v1043_v52 }
 0x4b5   : > { %v1537_v57 = vpop.eup %1536  ;;  %v1041_v58 = vadd.f32 1.0, %v1535_v55 }
 0x4b6   : > { %v1539_v59 = vpop.eup %1538  ;;  %v1039_v60 = vadd.f32 1.0, %v1537_v57  ;;  %1446 = vmatpush3.bf16.msra.mxu1 %v1051_v56 }
 0x4b7   : > { %v1541_v62 = vpop.eup %1540  ;;  %v1042_v1 = vadd.f32 1.0, %v1539_v59  ;;  %1451 = vmatprep.subr.bf16.mxu1 %v1567_v5  ;;  %v1049_v6 = vmul.f32 %v1041_v58, %v1017_v63 }
 0x4b8   : > { %v1040_v4 = vadd.f32 1.0, %v1541_v62  ;;  %v1047_v8 = vmul.f32 %v1039_v60, %v1015_v2 }
 0x4b9   : > { %v1050_v7 = vmul.f32 %v1042_v1, %v1018_v0  ;;  %1448 = vmatmul.mubr.msk.bf16.vlgmr.msra.gmra.mrb[8].mxu1 %vm1055_vm2, %v857_v61 }
 0x4ba   : > { %v1048_v9 = vmul.f32 %v1040_v4, %v1016_v3  ;;  %1452 = vmatpush3.bf16.msra.mxu1 %v1052_v54  ;;  %1453 = vmatprep.mubr.msk.bf16.mxu1 %vm1568_vm1, %v1567_v5 }
 0x4bb   : > { %v1054_v10 = vpack.c.bf16 %v1050_v7, %v1049_v6  ;;  %1463 = vmatprep.subr.bf16.mxu1 %v1567_v5 }
 0x4bc   : > { %v1053_v11 = vpack.c.bf16 %v1048_v9, %v1047_v8 }
 0x4be   : > { %1458 = vmatpush3.bf16.msra.mxu0 %v1053_v11 }
 0x4c1   : > { %1454 = vmatmul.mubr.msk.bf16.vlgmr.msra.gmra.mrb[12].mxu1 %vm1055_vm2, %v857_v61  ;;  %1460 = vmatmul.mubr.msk.bf16.vlgmr.msra.gmra.mrb[16].mxu0 %vm1055_vm2, %v857_v61 }
 0x4c2   : > { %1464 = vmatpush3.bf16.msra.mxu1 %v1054_v10  ;;  %1465 = vmatprep.mubr.msk.bf16.mxu1 %vm1568_vm1, %v1567_v5 }
 0x4c9   : > { %1466 = vmatmul.mubr.msk.bf16.vlgmr.msra.gmra.mrb[16].mxu1 %vm1055_vm2, %v857_v61 }
 0x58c   : > { %v1093_v12 = vpop.f32.mrb[8].mxu1 }
 0x58d   : > { %v1099_v13 = vpack.c.bf16 %v1093_v12, %v1093_v12  ;;  %v1449_v14 = vpop.f32.mrb[9].mxu1 }
 0x58e   : > { %v1096_v15 = vpop.f32.mrb[10].mxu1 }
 0x58f   : > { %1101 = vst.msk [vmem:[%s434_s25] sm:$0x3] %vm1100_vm3, %v1099_v13  ;;  %v1450_v16 = vpop.f32.mrb[11].mxu1 }
 0x594   : > { %v1136_v17 = vpop.f32.mrb[12].mxu1  ;;  %v1179_v18 = vpop.f32.mrb[16].mxu0 }
 0x595   : > { %v1142_v19 = vpack.c.bf16 %v1136_v17, %v1136_v17  ;;  %v1455_v20 = vpop.f32.mrb[13].mxu1  ;;  %v1185_v5 = vpack.c.bf16 %v1179_v18, %v1179_v18  ;;  %v1461_v21 = vpop.f32.mrb[17].mxu0 }
 0x596   : > { %v1139_v22 = vpop.f32.mrb[14].mxu1  ;;  %v1182_v23 = vpop.f32.mrb[18].mxu0 }
 0x597   : > { %1362 = vst.msk [vmem:[%s434_s25 + $0x2] sm:$0x3] %vm1100_vm3, %v1142_v19  ;;  %v1456_v24 = vpop.f32.mrb[15].mxu1  ;;  %1364 = vst.msk [vmem:[%s434_s25 + $0x4] sm:$0x3] %vm1100_vm3, %v1185_v5  ;;  %v1462_v25 = vpop.f32.mrb[19].mxu0 }
 0x59c   : > { %v1222_v26 = vpop.f32.mrb[16].mxu1 }
 0x59d   : > { %v1228_v27 = vpack.c.bf16 %v1222_v26, %v1222_v26  ;;  %v1467_v28 = vpop.f32.mrb[17].mxu1 }
 0x59e   : > { %v1225_v29 = vpop.f32.mrb[18].mxu1 }
 0x59f   : > { %1366 = vst.msk [vmem:[%s434_s25 + $0x6] sm:$0x3] %vm1100_vm3, %v1228_v27  ;;  %v1468_v30 = vpop.f32.mrb[19].mxu1 }
 0x5a0 PF: > { %s21_s19 = sadd.s32 1, %s1564_s19   ;;  %s1816_s17 = smov %s1560_s18 }
 0x5a1   : > { %p18_p5 = scmp.ge.s32.totalorder %s21_s19, 4   ;;  %s1817_s18 = smov %s1819_s20 }
 0x5a3   :  { %20 = sbr.rel (!%p18_p5) target bundleno = 2 (0x2), region = 100 }

</bundles_post_ra>
